<compile_context>
chip_gen: v7x
topology: tpu7x:2x2x1
jax: 0.10.0
libtpu: 0.0.40
codegen_flags: <defaults>
</compile_context>

<pallas_src>
import math

import jax
import jax.numpy as jnp
import numpy as np
from jax.experimental import pallas as pl
from jax.experimental.pallas import tpu as pltpu

D_MODEL = 32
N_HEAD = 4
D_HEAD = D_MODEL // N_HEAD
FFN_HIDDEN = 64
EPS = 1e-12          # hyunwoongko-style LayerNorm eps
NEG_INF = -10000.0   # masked_fill value
LANE = 128           # lane padding for packed parameter slabs


# ---------------------------------------------------------------------------
# Pallas kernel: whole layer, whole batch, one grid step
# ---------------------------------------------------------------------------
def decoder_layer_kernel(dec_ref, enc_ref, tmask_ref, smask_ref,
                         wstk_ref, w2_ref, vec_ref, out_ref):
    B, S_dec, D = dec_ref.shape
    S_enc = enc_ref.shape[1]
    H, dh, F = N_HEAD, D_HEAD, FFN_HIDDEN

    dec = dec_ref[...].reshape(B * S_dec, D)     # [B*Sq, D]
    enc = enc_ref[...].reshape(B * S_enc, D)     # [B*Sk, D]
    t_masked = tmask_ref[...] == 0.0             # [B, Sq, Sq]  True = disallowed
    s_masked = smask_ref[...] == 0.0             # [B, Sq, Sk]

    # --- packed parameters (scale already folded into wq/bq on host) ---
    wqkv1 = wstk_ref[0][:, :3 * D]     # [D, 3D]
    wo1 = wstk_ref[1][:, :D]
    wq2 = wstk_ref[2][:, :D]
    wkv2 = wstk_ref[3][:, :2 * D]
    wo2 = wstk_ref[4][:, :D]
    w1 = wstk_ref[5][:, :F]
    w2 = w2_ref[...]                    # [F, D]

    vecs = vec_ref[...]                 # [16, 128]
    bqkv1 = vecs[0:1, :3 * D]
    bo1 = vecs[1:2, :D]
    g1 = vecs[2:3, :D]
    be1 = vecs[3:4, :D]
    bq2 = vecs[4:5, :D]
    bkv2 = vecs[5:6, :2 * D]
    bo2 = vecs[6:7, :D]
    g2 = vecs[7:8, :D]
    be2 = vecs[8:9, :D]
    b1 = vecs[9:10, :F]
    b2 = vecs[10:11, :D]

    def layernorm(x, g, b):
        mean = jnp.mean(x, axis=-1, keepdims=True)
        var = jnp.mean((x - mean) ** 2, axis=-1, keepdims=True)  # unbiased=False
        return g * (x - mean) * jax.lax.rsqrt(var + EPS) + b

    def attention(q, k, v, masked, wo, bo, Sq, Sk):
        # q: [B*Sq, D] (pre-scaled by 1/sqrt(dh)); k, v: [B*Sk, D]
        q3 = q.reshape(B, Sq, D)
        k3 = k.reshape(B, Sk, D)
        v3 = v.reshape(B, Sk, D)
        acc = None
        for h in range(H):                      # unrolled; no concat needed
            sl = slice(h * dh, (h + 1) * dh)
            s = jnp.einsum('bqd,bkd->bqk', q3[:, :, sl], k3[:, :, sl],
                           preferred_element_type=jnp.float32)
            s = jnp.where(masked, NEG_INF, s)
            s = s - jnp.max(s, axis=-1, keepdims=True)
            p = jnp.exp(s)
            p = p * pl.reciprocal(jnp.sum(p, axis=-1, keepdims=True), approx=True)
            oh = jnp.einsum('bqk,bkd->bqd', p, v3[:, :, sl],
                            preferred_element_type=jnp.float32)
            contrib = jnp.dot(oh.reshape(B * Sq, dh), wo[sl, :],
                              preferred_element_type=jnp.float32)
            acc = contrib if acc is None else acc + contrib
        return acc + bo                          # [B*Sq, D]

    # --- masked self-attention + dropout(identity) + add & norm ---
    qkv = jnp.dot(dec, wqkv1, preferred_element_type=jnp.float32) + bqkv1
    x = attention(qkv[:, :D], qkv[:, D:2 * D], qkv[:, 2 * D:3 * D],
                  t_masked, wo1, bo1, S_dec, S_dec)
    x = layernorm(x + dec, g1, be1)

    # --- cross-attention + dropout(identity) + add & norm ---
    q2 = jnp.dot(x, wq2, preferred_element_type=jnp.float32) + bq2
    kv = jnp.dot(enc, wkv2, preferred_element_type=jnp.float32) + bkv2
    xa = attention(q2, kv[:, :D], kv[:, D:2 * D],
                   s_masked, wo2, bo2, S_dec, S_enc)
    x = layernorm(xa + x, g2, be2)

    # --- position-wise FFN (linear -> relu -> linear) ---
    hmid = jnp.maximum(jnp.dot(x, w1, preferred_element_type=jnp.float32) + b1, 0.0)
    y = jnp.dot(hmid, w2, preferred_element_type=jnp.float32) + b2

    # original module: return drop3(ffn(x))  -- no residual, no norm3
    out_ref[...] = y


# ---------------------------------------------------------------------------
# host-side parameter packing (folds 1/sqrt(d_head) into wq/bq)
# ---------------------------------------------------------------------------
def pack_params(p):
    D, F = D_MODEL, FFN_HIDDEN
    scale = 1.0 / math.sqrt(D_HEAD)

    wstk = np.zeros((6, D, LANE), np.float32)
    wstk[0, :, :3 * D] = np.concatenate(
        [np.asarray(p["wq1"]) * scale, np.asarray(p["wk1"]), np.asarray(p["wv1"])], axis=1)
    wstk[1, :, :D] = np.asarray(p["wo1"])
    wstk[2, :, :D] = np.asarray(p["wq2"]) * scale
    wstk[3, :, :2 * D] = np.concatenate(
        [np.asarray(p["wk2"]), np.asarray(p["wv2"])], axis=1)
    wstk[4, :, :D] = np.asarray(p["wo2"])
    wstk[5, :, :F] = np.asarray(p["w1"])

    vecs = np.zeros((16, LANE), np.float32)
    vecs[0, :3 * D] = np.concatenate(
        [np.asarray(p["bq1"])[0] * scale, np.asarray(p["bk1"])[0], np.asarray(p["bv1"])[0]])
    vecs[1, :D] = np.asarray(p["bo1"])[0]
    vecs[2, :D] = np.asarray(p["g1"])[0]
    vecs[3, :D] = np.asarray(p["be1"])[0]
    vecs[4, :D] = np.asarray(p["bq2"])[0] * scale
    vecs[5, :2 * D] = np.concatenate(
        [np.asarray(p["bk2"])[0], np.asarray(p["bv2"])[0]])
    vecs[6, :D] = np.asarray(p["bo2"])[0]
    vecs[7, :D] = np.asarray(p["g2"])[0]
    vecs[8, :D] = np.asarray(p["be2"])[0]
    vecs[9, :F] = np.asarray(p["b1"])[0]
    vecs[10, :D] = np.asarray(p["b2"])[0]

    return (jnp.asarray(wstk), jnp.asarray(p["w2"], jnp.float32), jnp.asarray(vecs))


# ---------------------------------------------------------------------------
# wrapper
# ---------------------------------------------------------------------------
def decoder_layer(dec, enc, t_mask, s_mask, packed):
    wstk, w2, vecs = packed
    B, S_dec, D = dec.shape
    tm = t_mask[:, 0]        # [B, S_dec, S_dec]
    sm = s_mask[:, 0]        # [B, S_dec, S_enc]

    def full_spec(shape):
        nd = len(shape)
        return pl.BlockSpec(shape, lambda i, nd=nd: (0,) * nd)

    out = pl.pallas_call(
        decoder_layer_kernel,
        out_shape=jax.ShapeDtypeStruct((B * S_dec, D), jnp.float32),
        grid_spec=pltpu.PrefetchScalarGridSpec(
            num_scalar_prefetch=0,
            grid=(1,),
            in_specs=[full_spec(dec.shape), full_spec(enc.shape),
                      full_spec(tm.shape), full_spec(sm.shape),
                      full_spec(wstk.shape), full_spec(w2.shape),
                      full_spec(vecs.shape)],
            out_specs=pl.BlockSpec((B * S_dec, D), lambda i: (0, 0)),
        ),
        compiler_params=pltpu.CompilerParams(dimension_semantics=("arbitrary",)),
    )(dec, enc, tm, sm, wstk, w2, vecs)
    return out.reshape(B, S_dec, D)


# ---------------------------------------------------------------------------
# pure-JAX reference (original, unpacked math) for a sanity check
# ---------------------------------------------------------------------------
def _layernorm_ref(x, gamma, beta):
    mean = jnp.mean(x, axis=-1, keepdims=True)
    var = jnp.mean((x - mean) ** 2, axis=-1, keepdims=True)
    return gamma * (x - mean) / jnp.sqrt(var + EPS) + beta


def _mha_ref(q_in, kv_in, mask, wq, bq, wk, bk, wv, bv, wo, bo):
    q = jnp.dot(q_in, wq) + bq
    k = jnp.dot(kv_in, wk) + bk
    v = jnp.dot(kv_in, wv) + bv
    scale = 1.0 / math.sqrt(D_HEAD)
    outs = []
    for h in range(N_HEAD):
        sl = slice(h * D_HEAD, (h + 1) * D_HEAD)
        score = jnp.dot(q[:, sl], k[:, sl].T) * scale
        score = jnp.where(mask == 0, NEG_INF, score)
        score = score - jnp.max(score, axis=-1, keepdims=True)
        p = jnp.exp(score)
        p = p / jnp.sum(p, axis=-1, keepdims=True)
        outs.append(jnp.dot(p, v[:, sl]))
    return jnp.dot(jnp.concatenate(outs, axis=-1), wo) + bo


def reference(dec, enc, t_mask, s_mask, p):
    def one(d, e, tm, sm):
        x = _mha_ref(d, d, tm, p["wq1"], p["bq1"], p["wk1"], p["bk1"],
                     p["wv1"], p["bv1"], p["wo1"], p["bo1"])
        x = _layernorm_ref(x + d, p["g1"], p["be1"])
        r = x
        x = _mha_ref(x, e, sm, p["wq2"], p["bq2"], p["wk2"], p["bk2"],
                     p["wv2"], p["bv2"], p["wo2"], p["bo2"])
        x = _layernorm_ref(x + r, p["g2"], p["be2"])
        h = jnp.maximum(jnp.dot(x, p["w1"]) + p["b1"], 0.0)
        return jnp.dot(h, p["w2"]) + p["b2"]

    return jax.vmap(one)(dec, enc, t_mask[:, 0], s_mask[:, 0])


def init_params(key):
    names_shapes = [
        ("wq1", (D_MODEL, D_MODEL)), ("bq1", (1, D_MODEL)),
        ("wk1", (D_MODEL, D_MODEL)), ("bk1", (1, D_MODEL)),
        ("wv1", (D_MODEL, D_MODEL)), ("bv1", (1, D_MODEL)),
        ("wo1", (D_MODEL, D_MODEL)), ("bo1", (1, D_MODEL)),
        ("g1", (1, D_MODEL)), ("be1", (1, D_MODEL)),
        ("wq2", (D_MODEL, D_MODEL)), ("bq2", (1, D_MODEL)),
        ("wk2", (D_MODEL, D_MODEL)), ("bk2", (1, D_MODEL)),
        ("wv2", (D_MODEL, D_MODEL)), ("bv2", (1, D_MODEL)),
        ("wo2", (D_MODEL, D_MODEL)), ("bo2", (1, D_MODEL)),
        ("g2", (1, D_MODEL)), ("be2", (1, D_MODEL)),
        ("w1", (D_MODEL, FFN_HIDDEN)), ("b1", (1, FFN_HIDDEN)),
        ("w2", (FFN_HIDDEN, D_MODEL)), ("b2", (1, D_MODEL)),
    ]
    params = {}
    keys = jax.random.split(key, len(names_shapes))
    for (name, shape), k in zip(names_shapes, keys):
        if name in ("g1", "g2"):
            params[name] = jnp.ones(shape, jnp.float32)
        elif name in ("be1", "be2"):
            params[name] = jnp.zeros(shape, jnp.float32)
        elif name.startswith("b"):
            params[name] = jnp.zeros(shape, jnp.float32) + 0.01
        else:
            params[name] = 0.1 * jax.random.normal(k, shape, jnp.float32)
    return params


if __name__ == "__main__":
    B, S_DEC, S_ENC = 2, 8, 8

    key = jax.random.PRNGKey(0)
    k_dec, k_enc, k_par = jax.random.split(key, 3)

    dec = jax.random.normal(k_dec, (B, S_DEC, D_MODEL), jnp.float32)
    enc = jax.random.normal(k_enc, (B, S_ENC, D_MODEL), jnp.float32)

    # causal (look-ahead) target mask; full source mask. 1 = attend, 0 = masked.
    t_mask = jnp.tril(jnp.ones((S_DEC, S_DEC), jnp.float32))[None, None]
    t_mask = jnp.broadcast_to(t_mask, (B, 1, S_DEC, S_DEC))
    s_mask = jnp.ones((B, 1, S_DEC, S_ENC), jnp.float32)

    params = init_params(k_par)
    packed = pack_params(params)

    out = decoder_layer(dec, enc, t_mask, s_mask, packed)
    out = jax.block_until_ready(out)

    ref = jax.block_until_ready(reference(dec, enc, t_mask, s_mask, params))
    np.testing.assert_allclose(np.asarray(out), np.asarray(ref), rtol=2e-2, atol=2e-2)

    print("KERNEL_OK")
</pallas_src>

<mosaic_0001>
module attributes {stable_mosaic.version = 11 : i64} {
  func.func @decoder_layer_kernel(%arg0: i32, %arg1: memref<2x8x32xf32, #tpu.memory_space<vmem>>, %arg2: memref<2x8x32xf32, #tpu.memory_space<vmem>>, %arg3: memref<2x8x8xf32, #tpu.memory_space<vmem>>, %arg4: memref<2x8x8xf32, #tpu.memory_space<vmem>>, %arg5: memref<6x32x128xf32, #tpu.memory_space<vmem>>, %arg6: memref<64x32xf32, #tpu.memory_space<vmem>>, %arg7: memref<16x128xf32, #tpu.memory_space<vmem>>, %arg8: memref<16x32xf32, #tpu.memory_space<vmem>>) attributes {dimension_semantics = [#tpu.dimension_semantics<arbitrary>], iteration_bounds = array<i64: 1>, scalar_prefetch = 0 : i64, scratch_operands = 0 : i64, tpu.core_type = #tpu.core_type<tc>, window_params = [{pipeline_mode = #tpu.pipeline_mode<synchronous>, transform_indices = @transform_0, window_bounds = array<i64: 2, 8, 32>}, {pipeline_mode = #tpu.pipeline_mode<synchronous>, transform_indices = @transform_1, window_bounds = array<i64: 2, 8, 32>}, {pipeline_mode = #tpu.pipeline_mode<synchronous>, transform_indices = @transform_2, window_bounds = array<i64: 2, 8, 8>}, {pipeline_mode = #tpu.pipeline_mode<synchronous>, transform_indices = @transform_3, window_bounds = array<i64: 2, 8, 8>}, {pipeline_mode = #tpu.pipeline_mode<synchronous>, transform_indices = @transform_4, window_bounds = array<i64: 6, 32, 128>}, {pipeline_mode = #tpu.pipeline_mode<synchronous>, transform_indices = @transform_5, window_bounds = array<i64: 64, 32>}, {pipeline_mode = #tpu.pipeline_mode<synchronous>, transform_indices = @transform_6, window_bounds = array<i64: 16, 128>}, {pipeline_mode = #tpu.pipeline_mode<synchronous>, transform_indices = @transform_7, window_bounds = array<i64: 16, 32>}]} {
    %c0 = arith.constant 0 : index
    %c0_0 = arith.constant 0 : index
    %c0_1 = arith.constant 0 : index
    %0 = vector.load %arg1[%c0, %c0_0, %c0_1] : memref<2x8x32xf32, #tpu.memory_space<vmem>>, vector<2x8x32xf32>
    %1 = vector.shape_cast %0 : vector<2x8x32xf32> to vector<16x32xf32>
    %c0_2 = arith.constant 0 : index
    %c0_3 = arith.constant 0 : index
    %c0_4 = arith.constant 0 : index
    %2 = vector.load %arg2[%c0_2, %c0_3, %c0_4] : memref<2x8x32xf32, #tpu.memory_space<vmem>>, vector<2x8x32xf32>
    %3 = vector.shape_cast %2 : vector<2x8x32xf32> to vector<16x32xf32>
    %c0_5 = arith.constant 0 : index
    %c0_6 = arith.constant 0 : index
    %c0_7 = arith.constant 0 : index
    %4 = vector.load %arg3[%c0_5, %c0_6, %c0_7] : memref<2x8x8xf32, #tpu.memory_space<vmem>>, vector<2x8x8xf32>
    %cst = arith.constant 0.000000e+00 : f32
    %5 = vector.broadcast %cst : f32 to vector<2x8x8xf32>
    %6 = arith.cmpf oeq, %4, %5 : vector<2x8x8xf32>
    %c0_8 = arith.constant 0 : index
    %c0_9 = arith.constant 0 : index
    %c0_10 = arith.constant 0 : index
    %7 = vector.load %arg4[%c0_8, %c0_9, %c0_10] : memref<2x8x8xf32, #tpu.memory_space<vmem>>, vector<2x8x8xf32>
    %cst_11 = arith.constant 0.000000e+00 : f32
    %8 = vector.broadcast %cst_11 : f32 to vector<2x8x8xf32>
    %9 = arith.cmpf oeq, %7, %8 : vector<2x8x8xf32>
    %c0_12 = arith.constant 0 : index
    %c0_13 = arith.constant 0 : index
    %c0_14 = arith.constant 0 : index
    %10 = vector.load %arg5[%c0_12, %c0_13, %c0_14] : memref<6x32x128xf32, #tpu.memory_space<vmem>>, vector<1x32x128xf32>
    %11 = vector.shape_cast %10 : vector<1x32x128xf32> to vector<32x128xf32>
    %12 = vector.extract_strided_slice %11 {offsets = [0, 0], sizes = [32, 96], strides = [1, 1]} : vector<32x128xf32> to vector<32x96xf32>
    %c1 = arith.constant 1 : index
    %c0_15 = arith.constant 0 : index
    %c0_16 = arith.constant 0 : index
    %13 = vector.load %arg5[%c1, %c0_15, %c0_16] : memref<6x32x128xf32, #tpu.memory_space<vmem>>, vector<1x32x128xf32>
    %14 = vector.shape_cast %13 : vector<1x32x128xf32> to vector<32x128xf32>
    %15 = vector.extract_strided_slice %14 {offsets = [0, 0], sizes = [32, 32], strides = [1, 1]} : vector<32x128xf32> to vector<32x32xf32>
    %c2 = arith.constant 2 : index
    %c0_17 = arith.constant 0 : index
    %c0_18 = arith.constant 0 : index
    %16 = vector.load %arg5[%c2, %c0_17, %c0_18] : memref<6x32x128xf32, #tpu.memory_space<vmem>>, vector<1x32x128xf32>
    %17 = vector.shape_cast %16 : vector<1x32x128xf32> to vector<32x128xf32>
    %18 = vector.extract_strided_slice %17 {offsets = [0, 0], sizes = [32, 32], strides = [1, 1]} : vector<32x128xf32> to vector<32x32xf32>
    %c3 = arith.constant 3 : index
    %c0_19 = arith.constant 0 : index
    %c0_20 = arith.constant 0 : index
    %19 = vector.load %arg5[%c3, %c0_19, %c0_20] : memref<6x32x128xf32, #tpu.memory_space<vmem>>, vector<1x32x128xf32>
    %20 = vector.shape_cast %19 : vector<1x32x128xf32> to vector<32x128xf32>
    %21 = vector.extract_strided_slice %20 {offsets = [0, 0], sizes = [32, 64], strides = [1, 1]} : vector<32x128xf32> to vector<32x64xf32>
    %c4 = arith.constant 4 : index
    %c0_21 = arith.constant 0 : index
    %c0_22 = arith.constant 0 : index
    %22 = vector.load %arg5[%c4, %c0_21, %c0_22] : memref<6x32x128xf32, #tpu.memory_space<vmem>>, vector<1x32x128xf32>
    %23 = vector.shape_cast %22 : vector<1x32x128xf32> to vector<32x128xf32>
    %24 = vector.extract_strided_slice %23 {offsets = [0, 0], sizes = [32, 32], strides = [1, 1]} : vector<32x128xf32> to vector<32x32xf32>
    %c5 = arith.constant 5 : index
    %c0_23 = arith.constant 0 : index
    %c0_24 = arith.constant 0 : index
    %25 = vector.load %arg5[%c5, %c0_23, %c0_24] : memref<6x32x128xf32, #tpu.memory_space<vmem>>, vector<1x32x128xf32>
    %26 = vector.shape_cast %25 : vector<1x32x128xf32> to vector<32x128xf32>
    %27 = vector.extract_strided_slice %26 {offsets = [0, 0], sizes = [32, 64], strides = [1, 1]} : vector<32x128xf32> to vector<32x64xf32>
    %c0_25 = arith.constant 0 : index
    %c0_26 = arith.constant 0 : index
    %28 = vector.load %arg6[%c0_25, %c0_26] : memref<64x32xf32, #tpu.memory_space<vmem>>, vector<64x32xf32>
    %c0_27 = arith.constant 0 : index
    %c0_28 = arith.constant 0 : index
    %29 = vector.load %arg7[%c0_27, %c0_28] : memref<16x128xf32, #tpu.memory_space<vmem>>, vector<16x128xf32>
    %30 = vector.extract_strided_slice %29 {offsets = [0, 0], sizes = [1, 96], strides = [1, 1]} : vector<16x128xf32> to vector<1x96xf32>
    %31 = vector.extract_strided_slice %29 {offsets = [1, 0], sizes = [1, 32], strides = [1, 1]} : vector<16x128xf32> to vector<1x32xf32>
    %32 = vector.extract_strided_slice %29 {offsets = [2, 0], sizes = [1, 32], strides = [1, 1]} : vector<16x128xf32> to vector<1x32xf32>
    %33 = vector.extract_strided_slice %29 {offsets = [3, 0], sizes = [1, 32], strides = [1, 1]} : vector<16x128xf32> to vector<1x32xf32>
    %34 = vector.extract_strided_slice %29 {offsets = [4, 0], sizes = [1, 32], strides = [1, 1]} : vector<16x128xf32> to vector<1x32xf32>
    %35 = vector.extract_strided_slice %29 {offsets = [5, 0], sizes = [1, 64], strides = [1, 1]} : vector<16x128xf32> to vector<1x64xf32>
    %36 = vector.extract_strided_slice %29 {offsets = [6, 0], sizes = [1, 32], strides = [1, 1]} : vector<16x128xf32> to vector<1x32xf32>
    %37 = vector.extract_strided_slice %29 {offsets = [7, 0], sizes = [1, 32], strides = [1, 1]} : vector<16x128xf32> to vector<1x32xf32>
    %38 = vector.extract_strided_slice %29 {offsets = [8, 0], sizes = [1, 32], strides = [1, 1]} : vector<16x128xf32> to vector<1x32xf32>
    %39 = vector.extract_strided_slice %29 {offsets = [9, 0], sizes = [1, 64], strides = [1, 1]} : vector<16x128xf32> to vector<1x64xf32>
    %40 = vector.extract_strided_slice %29 {offsets = [10, 0], sizes = [1, 32], strides = [1, 1]} : vector<16x128xf32> to vector<1x32xf32>
    %cst_29 = arith.constant dense<0.000000e+00> : vector<16x96xf32>
    %41 = tpu.matmul %1, %12, %cst_29 {dimension_numbers = #tpu.dot_dimension_numbers<[1], [0], [0], [1], [0, 0, 1, 1], [], []>} : vector<16x32xf32>, vector<32x96xf32>, vector<16x96xf32> -> vector<16x96xf32>
    %42 = vector.broadcast %30 : vector<1x96xf32> to vector<16x96xf32>
    %43 = arith.addf %41, %42 : vector<16x96xf32>
    %44 = vector.extract_strided_slice %43 {offsets = [0, 0], sizes = [16, 32], strides = [1, 1]} : vector<16x96xf32> to vector<16x32xf32>
    %45 = vector.extract_strided_slice %43 {offsets = [0, 32], sizes = [16, 32], strides = [1, 1]} : vector<16x96xf32> to vector<16x32xf32>
    %46 = vector.extract_strided_slice %43 {offsets = [0, 64], sizes = [16, 32], strides = [1, 1]} : vector<16x96xf32> to vector<16x32xf32>
    %47 = vector.shape_cast %44 : vector<16x32xf32> to vector<2x8x32xf32>
    %48 = vector.shape_cast %45 : vector<16x32xf32> to vector<2x8x32xf32>
    %49 = vector.shape_cast %46 : vector<16x32xf32> to vector<2x8x32xf32>
    %50 = vector.extract_strided_slice %47 {offsets = [0, 0, 0], sizes = [2, 8, 8], strides = [1, 1, 1]} : vector<2x8x32xf32> to vector<2x8x8xf32>
    %51 = vector.extract_strided_slice %48 {offsets = [0, 0, 0], sizes = [2, 8, 8], strides = [1, 1, 1]} : vector<2x8x32xf32> to vector<2x8x8xf32>
    "tpu.trace_start"() <{level = 10 : i32, message = "bqd,bkd->bqk"}> : () -> ()
    %cst_30 = arith.constant dense<0.000000e+00> : vector<2x8x8xf32>
    %52 = tpu.matmul %50, %51, %cst_30 {dimension_numbers = #tpu.dot_dimension_numbers<[2], [2], [1], [1], [0, 0, 0, 1, 1, 1], [0], [0]>} : vector<2x8x8xf32>, vector<2x8x8xf32>, vector<2x8x8xf32> -> vector<2x8x8xf32>
    %cst_31 = arith.constant -1.000000e+04 : f32
    "tpu.trace_stop"() : () -> ()
    %53 = vector.broadcast %cst_31 : f32 to vector<2x8x8xf32>
    %54 = arith.select %6, %53, %52 : vector<2x8x8xi1>, vector<2x8x8xf32>
    %cst_32 = arith.constant dense<0xFF800000> : vector<2x8xf32>
    %55 = vector.multi_reduction <maximumf>, %54, %cst_32 [2] : vector<2x8x8xf32> to vector<2x8xf32>
    %56 = vector.shape_cast %55 : vector<2x8xf32> to vector<2x8x1xf32>
    %57 = vector.broadcast %56 : vector<2x8x1xf32> to vector<2x8x8xf32>
    %58 = arith.subf %54, %57 : vector<2x8x8xf32>
    %59 = math.exp %58 : vector<2x8x8xf32>
    %cst_33 = arith.constant dense<0.000000e+00> : vector<2x8xf32>
    %60 = vector.multi_reduction <add>, %59, %cst_33 [2] : vector<2x8x8xf32> to vector<2x8xf32>
    %61 = vector.shape_cast %60 : vector<2x8xf32> to vector<2x8x1xf32>
    %62 = tpu.reciprocal %61 {approx = true} : vector<2x8x1xf32> -> vector<2x8x1xf32>
    %63 = vector.broadcast %62 : vector<2x8x1xf32> to vector<2x8x8xf32>
    %64 = arith.mulf %59, %63 : vector<2x8x8xf32>
    %65 = vector.extract_strided_slice %49 {offsets = [0, 0, 0], sizes = [2, 8, 8], strides = [1, 1, 1]} : vector<2x8x32xf32> to vector<2x8x8xf32>
    "tpu.trace_start"() <{level = 10 : i32, message = "bqk,bkd->bqd"}> : () -> ()
    %cst_34 = arith.constant dense<0.000000e+00> : vector<2x8x8xf32>
    %66 = tpu.matmul %64, %65, %cst_34 {dimension_numbers = #tpu.dot_dimension_numbers<[2], [1], [1], [2], [0, 0, 0, 1, 1, 2], [0], [0]>} : vector<2x8x8xf32>, vector<2x8x8xf32>, vector<2x8x8xf32> -> vector<2x8x8xf32>
    "tpu.trace_stop"() : () -> ()
    %67 = vector.shape_cast %66 : vector<2x8x8xf32> to vector<16x8xf32>
    %68 = vector.extract_strided_slice %15 {offsets = [0, 0], sizes = [8, 32], strides = [1, 1]} : vector<32x32xf32> to vector<8x32xf32>
    %cst_35 = arith.constant dense<0.000000e+00> : vector<16x32xf32>
    %69 = tpu.matmul %67, %68, %cst_35 {dimension_numbers = #tpu.dot_dimension_numbers<[1], [0], [0], [1], [0, 0, 1, 1], [], []>} : vector<16x8xf32>, vector<8x32xf32>, vector<16x32xf32> -> vector<16x32xf32>
    %70 = vector.extract_strided_slice %47 {offsets = [0, 0, 8], sizes = [2, 8, 8], strides = [1, 1, 1]} : vector<2x8x32xf32> to vector<2x8x8xf32>
    %71 = vector.extract_strided_slice %48 {offsets = [0, 0, 8], sizes = [2, 8, 8], strides = [1, 1, 1]} : vector<2x8x32xf32> to vector<2x8x8xf32>
    "tpu.trace_start"() <{level = 10 : i32, message = "bqd,bkd->bqk"}> : () -> ()
    %cst_36 = arith.constant dense<0.000000e+00> : vector<2x8x8xf32>
    %72 = tpu.matmul %70, %71, %cst_36 {dimension_numbers = #tpu.dot_dimension_numbers<[2], [2], [1], [1], [0, 0, 0, 1, 1, 1], [0], [0]>} : vector<2x8x8xf32>, vector<2x8x8xf32>, vector<2x8x8xf32> -> vector<2x8x8xf32>
    %cst_37 = arith.constant -1.000000e+04 : f32
    "tpu.trace_stop"() : () -> ()
    %73 = vector.broadcast %cst_37 : f32 to vector<2x8x8xf32>
    %74 = arith.select %6, %73, %72 : vector<2x8x8xi1>, vector<2x8x8xf32>
    %cst_38 = arith.constant dense<0xFF800000> : vector<2x8xf32>
    %75 = vector.multi_reduction <maximumf>, %74, %cst_38 [2] : vector<2x8x8xf32> to vector<2x8xf32>
    %76 = vector.shape_cast %75 : vector<2x8xf32> to vector<2x8x1xf32>
    %77 = vector.broadcast %76 : vector<2x8x1xf32> to vector<2x8x8xf32>
    %78 = arith.subf %74, %77 : vector<2x8x8xf32>
    %79 = math.exp %78 : vector<2x8x8xf32>
    %cst_39 = arith.constant dense<0.000000e+00> : vector<2x8xf32>
    %80 = vector.multi_reduction <add>, %79, %cst_39 [2] : vector<2x8x8xf32> to vector<2x8xf32>
    %81 = vector.shape_cast %80 : vector<2x8xf32> to vector<2x8x1xf32>
    %82 = tpu.reciprocal %81 {approx = true} : vector<2x8x1xf32> -> vector<2x8x1xf32>
    %83 = vector.broadcast %82 : vector<2x8x1xf32> to vector<2x8x8xf32>
    %84 = arith.mulf %79, %83 : vector<2x8x8xf32>
    %85 = vector.extract_strided_slice %49 {offsets = [0, 0, 8], sizes = [2, 8, 8], strides = [1, 1, 1]} : vector<2x8x32xf32> to vector<2x8x8xf32>
    "tpu.trace_start"() <{level = 10 : i32, message = "bqk,bkd->bqd"}> : () -> ()
    %cst_40 = arith.constant dense<0.000000e+00> : vector<2x8x8xf32>
    %86 = tpu.matmul %84, %85, %cst_40 {dimension_numbers = #tpu.dot_dimension_numbers<[2], [1], [1], [2], [0, 0, 0, 1, 1, 2], [0], [0]>} : vector<2x8x8xf32>, vector<2x8x8xf32>, vector<2x8x8xf32> -> vector<2x8x8xf32>
    "tpu.trace_stop"() : () -> ()
    %87 = vector.shape_cast %86 : vector<2x8x8xf32> to vector<16x8xf32>
    %88 = vector.extract_strided_slice %15 {offsets = [8, 0], sizes = [8, 32], strides = [1, 1]} : vector<32x32xf32> to vector<8x32xf32>
    %cst_41 = arith.constant dense<0.000000e+00> : vector<16x32xf32>
    %89 = tpu.matmul %87, %88, %cst_41 {dimension_numbers = #tpu.dot_dimension_numbers<[1], [0], [0], [1], [0, 0, 1, 1], [], []>} : vector<16x8xf32>, vector<8x32xf32>, vector<16x32xf32> -> vector<16x32xf32>
    %90 = arith.addf %69, %89 : vector<16x32xf32>
    %91 = vector.extract_strided_slice %47 {offsets = [0, 0, 16], sizes = [2, 8, 8], strides = [1, 1, 1]} : vector<2x8x32xf32> to vector<2x8x8xf32>
    %92 = vector.extract_strided_slice %48 {offsets = [0, 0, 16], sizes = [2, 8, 8], strides = [1, 1, 1]} : vector<2x8x32xf32> to vector<2x8x8xf32>
    "tpu.trace_start"() <{level = 10 : i32, message = "bqd,bkd->bqk"}> : () -> ()
    %cst_42 = arith.constant dense<0.000000e+00> : vector<2x8x8xf32>
    %93 = tpu.matmul %91, %92, %cst_42 {dimension_numbers = #tpu.dot_dimension_numbers<[2], [2], [1], [1], [0, 0, 0, 1, 1, 1], [0], [0]>} : vector<2x8x8xf32>, vector<2x8x8xf32>, vector<2x8x8xf32> -> vector<2x8x8xf32>
    %cst_43 = arith.constant -1.000000e+04 : f32
    "tpu.trace_stop"() : () -> ()
    %94 = vector.broadcast %cst_43 : f32 to vector<2x8x8xf32>
    %95 = arith.select %6, %94, %93 : vector<2x8x8xi1>, vector<2x8x8xf32>
    %cst_44 = arith.constant dense<0xFF800000> : vector<2x8xf32>
    %96 = vector.multi_reduction <maximumf>, %95, %cst_44 [2] : vector<2x8x8xf32> to vector<2x8xf32>
    %97 = vector.shape_cast %96 : vector<2x8xf32> to vector<2x8x1xf32>
    %98 = vector.broadcast %97 : vector<2x8x1xf32> to vector<2x8x8xf32>
    %99 = arith.subf %95, %98 : vector<2x8x8xf32>
    %100 = math.exp %99 : vector<2x8x8xf32>
    %cst_45 = arith.constant dense<0.000000e+00> : vector<2x8xf32>
    %101 = vector.multi_reduction <add>, %100, %cst_45 [2] : vector<2x8x8xf32> to vector<2x8xf32>
    %102 = vector.shape_cast %101 : vector<2x8xf32> to vector<2x8x1xf32>
    %103 = tpu.reciprocal %102 {approx = true} : vector<2x8x1xf32> -> vector<2x8x1xf32>
    %104 = vector.broadcast %103 : vector<2x8x1xf32> to vector<2x8x8xf32>
    %105 = arith.mulf %100, %104 : vector<2x8x8xf32>
    %106 = vector.extract_strided_slice %49 {offsets = [0, 0, 16], sizes = [2, 8, 8], strides = [1, 1, 1]} : vector<2x8x32xf32> to vector<2x8x8xf32>
    "tpu.trace_start"() <{level = 10 : i32, message = "bqk,bkd->bqd"}> : () -> ()
    %cst_46 = arith.constant dense<0.000000e+00> : vector<2x8x8xf32>
    %107 = tpu.matmul %105, %106, %cst_46 {dimension_numbers = #tpu.dot_dimension_numbers<[2], [1], [1], [2], [0, 0, 0, 1, 1, 2], [0], [0]>} : vector<2x8x8xf32>, vector<2x8x8xf32>, vector<2x8x8xf32> -> vector<2x8x8xf32>
    "tpu.trace_stop"() : () -> ()
    %108 = vector.shape_cast %107 : vector<2x8x8xf32> to vector<16x8xf32>
    %109 = vector.extract_strided_slice %15 {offsets = [16, 0], sizes = [8, 32], strides = [1, 1]} : vector<32x32xf32> to vector<8x32xf32>
    %cst_47 = arith.constant dense<0.000000e+00> : vector<16x32xf32>
    %110 = tpu.matmul %108, %109, %cst_47 {dimension_numbers = #tpu.dot_dimension_numbers<[1], [0], [0], [1], [0, 0, 1, 1], [], []>} : vector<16x8xf32>, vector<8x32xf32>, vector<16x32xf32> -> vector<16x32xf32>
    %111 = arith.addf %90, %110 : vector<16x32xf32>
    %112 = vector.extract_strided_slice %47 {offsets = [0, 0, 24], sizes = [2, 8, 8], strides = [1, 1, 1]} : vector<2x8x32xf32> to vector<2x8x8xf32>
    %113 = vector.extract_strided_slice %48 {offsets = [0, 0, 24], sizes = [2, 8, 8], strides = [1, 1, 1]} : vector<2x8x32xf32> to vector<2x8x8xf32>
    "tpu.trace_start"() <{level = 10 : i32, message = "bqd,bkd->bqk"}> : () -> ()
    %cst_48 = arith.constant dense<0.000000e+00> : vector<2x8x8xf32>
    %114 = tpu.matmul %112, %113, %cst_48 {dimension_numbers = #tpu.dot_dimension_numbers<[2], [2], [1], [1], [0, 0, 0, 1, 1, 1], [0], [0]>} : vector<2x8x8xf32>, vector<2x8x8xf32>, vector<2x8x8xf32> -> vector<2x8x8xf32>
    %cst_49 = arith.constant -1.000000e+04 : f32
    "tpu.trace_stop"() : () -> ()
    %115 = vector.broadcast %cst_49 : f32 to vector<2x8x8xf32>
    %116 = arith.select %6, %115, %114 : vector<2x8x8xi1>, vector<2x8x8xf32>
    %cst_50 = arith.constant dense<0xFF800000> : vector<2x8xf32>
    %117 = vector.multi_reduction <maximumf>, %116, %cst_50 [2] : vector<2x8x8xf32> to vector<2x8xf32>
    %118 = vector.shape_cast %117 : vector<2x8xf32> to vector<2x8x1xf32>
    %119 = vector.broadcast %118 : vector<2x8x1xf32> to vector<2x8x8xf32>
    %120 = arith.subf %116, %119 : vector<2x8x8xf32>
    %121 = math.exp %120 : vector<2x8x8xf32>
    %cst_51 = arith.constant dense<0.000000e+00> : vector<2x8xf32>
    %122 = vector.multi_reduction <add>, %121, %cst_51 [2] : vector<2x8x8xf32> to vector<2x8xf32>
    %123 = vector.shape_cast %122 : vector<2x8xf32> to vector<2x8x1xf32>
    %124 = tpu.reciprocal %123 {approx = true} : vector<2x8x1xf32> -> vector<2x8x1xf32>
    %125 = vector.broadcast %124 : vector<2x8x1xf32> to vector<2x8x8xf32>
    %126 = arith.mulf %121, %125 : vector<2x8x8xf32>
    %127 = vector.extract_strided_slice %49 {offsets = [0, 0, 24], sizes = [2, 8, 8], strides = [1, 1, 1]} : vector<2x8x32xf32> to vector<2x8x8xf32>
    "tpu.trace_start"() <{level = 10 : i32, message = "bqk,bkd->bqd"}> : () -> ()
    %cst_52 = arith.constant dense<0.000000e+00> : vector<2x8x8xf32>
    %128 = tpu.matmul %126, %127, %cst_52 {dimension_numbers = #tpu.dot_dimension_numbers<[2], [1], [1], [2], [0, 0, 0, 1, 1, 2], [0], [0]>} : vector<2x8x8xf32>, vector<2x8x8xf32>, vector<2x8x8xf32> -> vector<2x8x8xf32>
    "tpu.trace_stop"() : () -> ()
    %129 = vector.shape_cast %128 : vector<2x8x8xf32> to vector<16x8xf32>
    %130 = vector.extract_strided_slice %15 {offsets = [24, 0], sizes = [8, 32], strides = [1, 1]} : vector<32x32xf32> to vector<8x32xf32>
    %cst_53 = arith.constant dense<0.000000e+00> : vector<16x32xf32>
    %131 = tpu.matmul %129, %130, %cst_53 {dimension_numbers = #tpu.dot_dimension_numbers<[1], [0], [0], [1], [0, 0, 1, 1], [], []>} : vector<16x8xf32>, vector<8x32xf32>, vector<16x32xf32> -> vector<16x32xf32>
    %132 = arith.addf %111, %131 : vector<16x32xf32>
    %133 = vector.broadcast %31 : vector<1x32xf32> to vector<16x32xf32>
    %134 = arith.addf %132, %133 : vector<16x32xf32>
    %135 = arith.addf %134, %1 : vector<16x32xf32>
    %cst_54 = arith.constant dense<0.000000e+00> : vector<16xf32>
    %136 = vector.multi_reduction <add>, %135, %cst_54 [1] : vector<16x32xf32> to vector<16xf32>
    %137 = vector.shape_cast %136 : vector<16xf32> to vector<16x1xf32>
    %cst_55 = arith.constant 3.200000e+01 : f32
    %138 = vector.broadcast %cst_55 : f32 to vector<16x1xf32>
    %139 = arith.divf %137, %138 : vector<16x1xf32>
    %140 = vector.broadcast %139 : vector<16x1xf32> to vector<16x32xf32>
    %141 = arith.subf %135, %140 : vector<16x32xf32>
    %142 = arith.mulf %141, %141 : vector<16x32xf32>
    %cst_56 = arith.constant dense<0.000000e+00> : vector<16xf32>
    %143 = vector.multi_reduction <add>, %142, %cst_56 [1] : vector<16x32xf32> to vector<16xf32>
    %144 = vector.shape_cast %143 : vector<16xf32> to vector<16x1xf32>
    %cst_57 = arith.constant 3.200000e+01 : f32
    %145 = vector.broadcast %cst_57 : f32 to vector<16x1xf32>
    %146 = arith.divf %144, %145 : vector<16x1xf32>
    %147 = vector.broadcast %139 : vector<16x1xf32> to vector<16x32xf32>
    %148 = arith.subf %135, %147 : vector<16x32xf32>
    %149 = vector.broadcast %32 : vector<1x32xf32> to vector<16x32xf32>
    %150 = arith.mulf %149, %148 : vector<16x32xf32>
    %cst_58 = arith.constant 9.99999996E-13 : f32
    %151 = vector.broadcast %cst_58 : f32 to vector<16x1xf32>
    %152 = arith.addf %146, %151 : vector<16x1xf32>
    %153 = math.rsqrt %152 : vector<16x1xf32>
    %154 = vector.broadcast %153 : vector<16x1xf32> to vector<16x32xf32>
    %155 = arith.mulf %150, %154 : vector<16x32xf32>
    %156 = vector.broadcast %33 : vector<1x32xf32> to vector<16x32xf32>
    %157 = arith.addf %155, %156 : vector<16x32xf32>
    %cst_59 = arith.constant dense<0.000000e+00> : vector<16x32xf32>
    %158 = tpu.matmul %157, %18, %cst_59 {dimension_numbers = #tpu.dot_dimension_numbers<[1], [0], [0], [1], [0, 0, 1, 1], [], []>} : vector<16x32xf32>, vector<32x32xf32>, vector<16x32xf32> -> vector<16x32xf32>
    %159 = vector.broadcast %34 : vector<1x32xf32> to vector<16x32xf32>
    %160 = arith.addf %158, %159 : vector<16x32xf32>
    %cst_60 = arith.constant dense<0.000000e+00> : vector<16x64xf32>
    %161 = tpu.matmul %3, %21, %cst_60 {dimension_numbers = #tpu.dot_dimension_numbers<[1], [0], [0], [1], [0, 0, 1, 1], [], []>} : vector<16x32xf32>, vector<32x64xf32>, vector<16x64xf32> -> vector<16x64xf32>
    %162 = vector.broadcast %35 : vector<1x64xf32> to vector<16x64xf32>
    %163 = arith.addf %161, %162 : vector<16x64xf32>
    %164 = vector.extract_strided_slice %163 {offsets = [0, 0], sizes = [16, 32], strides = [1, 1]} : vector<16x64xf32> to vector<16x32xf32>
    %165 = vector.extract_strided_slice %163 {offsets = [0, 32], sizes = [16, 32], strides = [1, 1]} : vector<16x64xf32> to vector<16x32xf32>
    %166 = vector.shape_cast %160 : vector<16x32xf32> to vector<2x8x32xf32>
    %167 = vector.shape_cast %164 : vector<16x32xf32> to vector<2x8x32xf32>
    %168 = vector.shape_cast %165 : vector<16x32xf32> to vector<2x8x32xf32>
    %169 = vector.extract_strided_slice %166 {offsets = [0, 0, 0], sizes = [2, 8, 8], strides = [1, 1, 1]} : vector<2x8x32xf32> to vector<2x8x8xf32>
    %170 = vector.extract_strided_slice %167 {offsets = [0, 0, 0], sizes = [2, 8, 8], strides = [1, 1, 1]} : vector<2x8x32xf32> to vector<2x8x8xf32>
    "tpu.trace_start"() <{level = 10 : i32, message = "bqd,bkd->bqk"}> : () -> ()
    %cst_61 = arith.constant dense<0.000000e+00> : vector<2x8x8xf32>
    %171 = tpu.matmul %169, %170, %cst_61 {dimension_numbers = #tpu.dot_dimension_numbers<[2], [2], [1], [1], [0, 0, 0, 1, 1, 1], [0], [0]>} : vector<2x8x8xf32>, vector<2x8x8xf32>, vector<2x8x8xf32> -> vector<2x8x8xf32>
    %cst_62 = arith.constant -1.000000e+04 : f32
    "tpu.trace_stop"() : () -> ()
    %172 = vector.broadcast %cst_62 : f32 to vector<2x8x8xf32>
    %173 = arith.select %9, %172, %171 : vector<2x8x8xi1>, vector<2x8x8xf32>
    %cst_63 = arith.constant dense<0xFF800000> : vector<2x8xf32>
    %174 = vector.multi_reduction <maximumf>, %173, %cst_63 [2] : vector<2x8x8xf32> to vector<2x8xf32>
    %175 = vector.shape_cast %174 : vector<2x8xf32> to vector<2x8x1xf32>
    %176 = vector.broadcast %175 : vector<2x8x1xf32> to vector<2x8x8xf32>
    %177 = arith.subf %173, %176 : vector<2x8x8xf32>
    %178 = math.exp %177 : vector<2x8x8xf32>
    %cst_64 = arith.constant dense<0.000000e+00> : vector<2x8xf32>
    %179 = vector.multi_reduction <add>, %178, %cst_64 [2] : vector<2x8x8xf32> to vector<2x8xf32>
    %180 = vector.shape_cast %179 : vector<2x8xf32> to vector<2x8x1xf32>
    %181 = tpu.reciprocal %180 {approx = true} : vector<2x8x1xf32> -> vector<2x8x1xf32>
    %182 = vector.broadcast %181 : vector<2x8x1xf32> to vector<2x8x8xf32>
    %183 = arith.mulf %178, %182 : vector<2x8x8xf32>
    %184 = vector.extract_strided_slice %168 {offsets = [0, 0, 0], sizes = [2, 8, 8], strides = [1, 1, 1]} : vector<2x8x32xf32> to vector<2x8x8xf32>
    "tpu.trace_start"() <{level = 10 : i32, message = "bqk,bkd->bqd"}> : () -> ()
    %cst_65 = arith.constant dense<0.000000e+00> : vector<2x8x8xf32>
    %185 = tpu.matmul %183, %184, %cst_65 {dimension_numbers = #tpu.dot_dimension_numbers<[2], [1], [1], [2], [0, 0, 0, 1, 1, 2], [0], [0]>} : vector<2x8x8xf32>, vector<2x8x8xf32>, vector<2x8x8xf32> -> vector<2x8x8xf32>
    "tpu.trace_stop"() : () -> ()
    %186 = vector.shape_cast %185 : vector<2x8x8xf32> to vector<16x8xf32>
    %187 = vector.extract_strided_slice %24 {offsets = [0, 0], sizes = [8, 32], strides = [1, 1]} : vector<32x32xf32> to vector<8x32xf32>
    %cst_66 = arith.constant dense<0.000000e+00> : vector<16x32xf32>
    %188 = tpu.matmul %186, %187, %cst_66 {dimension_numbers = #tpu.dot_dimension_numbers<[1], [0], [0], [1], [0, 0, 1, 1], [], []>} : vector<16x8xf32>, vector<8x32xf32>, vector<16x32xf32> -> vector<16x32xf32>
    %189 = vector.extract_strided_slice %166 {offsets = [0, 0, 8], sizes = [2, 8, 8], strides = [1, 1, 1]} : vector<2x8x32xf32> to vector<2x8x8xf32>
    %190 = vector.extract_strided_slice %167 {offsets = [0, 0, 8], sizes = [2, 8, 8], strides = [1, 1, 1]} : vector<2x8x32xf32> to vector<2x8x8xf32>
    "tpu.trace_start"() <{level = 10 : i32, message = "bqd,bkd->bqk"}> : () -> ()
    %cst_67 = arith.constant dense<0.000000e+00> : vector<2x8x8xf32>
    %191 = tpu.matmul %189, %190, %cst_67 {dimension_numbers = #tpu.dot_dimension_numbers<[2], [2], [1], [1], [0, 0, 0, 1, 1, 1], [0], [0]>} : vector<2x8x8xf32>, vector<2x8x8xf32>, vector<2x8x8xf32> -> vector<2x8x8xf32>
    %cst_68 = arith.constant -1.000000e+04 : f32
    "tpu.trace_stop"() : () -> ()
    %192 = vector.broadcast %cst_68 : f32 to vector<2x8x8xf32>
    %193 = arith.select %9, %192, %191 : vector<2x8x8xi1>, vector<2x8x8xf32>
    %cst_69 = arith.constant dense<0xFF800000> : vector<2x8xf32>
    %194 = vector.multi_reduction <maximumf>, %193, %cst_69 [2] : vector<2x8x8xf32> to vector<2x8xf32>
    %195 = vector.shape_cast %194 : vector<2x8xf32> to vector<2x8x1xf32>
    %196 = vector.broadcast %195 : vector<2x8x1xf32> to vector<2x8x8xf32>
    %197 = arith.subf %193, %196 : vector<2x8x8xf32>
    %198 = math.exp %197 : vector<2x8x8xf32>
    %cst_70 = arith.constant dense<0.000000e+00> : vector<2x8xf32>
    %199 = vector.multi_reduction <add>, %198, %cst_70 [2] : vector<2x8x8xf32> to vector<2x8xf32>
    %200 = vector.shape_cast %199 : vector<2x8xf32> to vector<2x8x1xf32>
    %201 = tpu.reciprocal %200 {approx = true} : vector<2x8x1xf32> -> vector<2x8x1xf32>
    %202 = vector.broadcast %201 : vector<2x8x1xf32> to vector<2x8x8xf32>
    %203 = arith.mulf %198, %202 : vector<2x8x8xf32>
    %204 = vector.extract_strided_slice %168 {offsets = [0, 0, 8], sizes = [2, 8, 8], strides = [1, 1, 1]} : vector<2x8x32xf32> to vector<2x8x8xf32>
    "tpu.trace_start"() <{level = 10 : i32, message = "bqk,bkd->bqd"}> : () -> ()
    %cst_71 = arith.constant dense<0.000000e+00> : vector<2x8x8xf32>
    %205 = tpu.matmul %203, %204, %cst_71 {dimension_numbers = #tpu.dot_dimension_numbers<[2], [1], [1], [2], [0, 0, 0, 1, 1, 2], [0], [0]>} : vector<2x8x8xf32>, vector<2x8x8xf32>, vector<2x8x8xf32> -> vector<2x8x8xf32>
    "tpu.trace_stop"() : () -> ()
    %206 = vector.shape_cast %205 : vector<2x8x8xf32> to vector<16x8xf32>
    %207 = vector.extract_strided_slice %24 {offsets = [8, 0], sizes = [8, 32], strides = [1, 1]} : vector<32x32xf32> to vector<8x32xf32>
    %cst_72 = arith.constant dense<0.000000e+00> : vector<16x32xf32>
    %208 = tpu.matmul %206, %207, %cst_72 {dimension_numbers = #tpu.dot_dimension_numbers<[1], [0], [0], [1], [0, 0, 1, 1], [], []>} : vector<16x8xf32>, vector<8x32xf32>, vector<16x32xf32> -> vector<16x32xf32>
    %209 = arith.addf %188, %208 : vector<16x32xf32>
    %210 = vector.extract_strided_slice %166 {offsets = [0, 0, 16], sizes = [2, 8, 8], strides = [1, 1, 1]} : vector<2x8x32xf32> to vector<2x8x8xf32>
    %211 = vector.extract_strided_slice %167 {offsets = [0, 0, 16], sizes = [2, 8, 8], strides = [1, 1, 1]} : vector<2x8x32xf32> to vector<2x8x8xf32>
    "tpu.trace_start"() <{level = 10 : i32, message = "bqd,bkd->bqk"}> : () -> ()
    %cst_73 = arith.constant dense<0.000000e+00> : vector<2x8x8xf32>
    %212 = tpu.matmul %210, %211, %cst_73 {dimension_numbers = #tpu.dot_dimension_numbers<[2], [2], [1], [1], [0, 0, 0, 1, 1, 1], [0], [0]>} : vector<2x8x8xf32>, vector<2x8x8xf32>, vector<2x8x8xf32> -> vector<2x8x8xf32>
    %cst_74 = arith.constant -1.000000e+04 : f32
    "tpu.trace_stop"() : () -> ()
    %213 = vector.broadcast %cst_74 : f32 to vector<2x8x8xf32>
    %214 = arith.select %9, %213, %212 : vector<2x8x8xi1>, vector<2x8x8xf32>
    %cst_75 = arith.constant dense<0xFF800000> : vector<2x8xf32>
    %215 = vector.multi_reduction <maximumf>, %214, %cst_75 [2] : vector<2x8x8xf32> to vector<2x8xf32>
    %216 = vector.shape_cast %215 : vector<2x8xf32> to vector<2x8x1xf32>
    %217 = vector.broadcast %216 : vector<2x8x1xf32> to vector<2x8x8xf32>
    %218 = arith.subf %214, %217 : vector<2x8x8xf32>
    %219 = math.exp %218 : vector<2x8x8xf32>
    %cst_76 = arith.constant dense<0.000000e+00> : vector<2x8xf32>
    %220 = vector.multi_reduction <add>, %219, %cst_76 [2] : vector<2x8x8xf32> to vector<2x8xf32>
    %221 = vector.shape_cast %220 : vector<2x8xf32> to vector<2x8x1xf32>
    %222 = tpu.reciprocal %221 {approx = true} : vector<2x8x1xf32> -> vector<2x8x1xf32>
    %223 = vector.broadcast %222 : vector<2x8x1xf32> to vector<2x8x8xf32>
    %224 = arith.mulf %219, %223 : vector<2x8x8xf32>
    %225 = vector.extract_strided_slice %168 {offsets = [0, 0, 16], sizes = [2, 8, 8], strides = [1, 1, 1]} : vector<2x8x32xf32> to vector<2x8x8xf32>
    "tpu.trace_start"() <{level = 10 : i32, message = "bqk,bkd->bqd"}> : () -> ()
    %cst_77 = arith.constant dense<0.000000e+00> : vector<2x8x8xf32>
    %226 = tpu.matmul %224, %225, %cst_77 {dimension_numbers = #tpu.dot_dimension_numbers<[2], [1], [1], [2], [0, 0, 0, 1, 1, 2], [0], [0]>} : vector<2x8x8xf32>, vector<2x8x8xf32>, vector<2x8x8xf32> -> vector<2x8x8xf32>
    "tpu.trace_stop"() : () -> ()
    %227 = vector.shape_cast %226 : vector<2x8x8xf32> to vector<16x8xf32>
    %228 = vector.extract_strided_slice %24 {offsets = [16, 0], sizes = [8, 32], strides = [1, 1]} : vector<32x32xf32> to vector<8x32xf32>
    %cst_78 = arith.constant dense<0.000000e+00> : vector<16x32xf32>
    %229 = tpu.matmul %227, %228, %cst_78 {dimension_numbers = #tpu.dot_dimension_numbers<[1], [0], [0], [1], [0, 0, 1, 1], [], []>} : vector<16x8xf32>, vector<8x32xf32>, vector<16x32xf32> -> vector<16x32xf32>
    %230 = arith.addf %209, %229 : vector<16x32xf32>
    %231 = vector.extract_strided_slice %166 {offsets = [0, 0, 24], sizes = [2, 8, 8], strides = [1, 1, 1]} : vector<2x8x32xf32> to vector<2x8x8xf32>
    %232 = vector.extract_strided_slice %167 {offsets = [0, 0, 24], sizes = [2, 8, 8], strides = [1, 1, 1]} : vector<2x8x32xf32> to vector<2x8x8xf32>
    "tpu.trace_start"() <{level = 10 : i32, message = "bqd,bkd->bqk"}> : () -> ()
    %cst_79 = arith.constant dense<0.000000e+00> : vector<2x8x8xf32>
    %233 = tpu.matmul %231, %232, %cst_79 {dimension_numbers = #tpu.dot_dimension_numbers<[2], [2], [1], [1], [0, 0, 0, 1, 1, 1], [0], [0]>} : vector<2x8x8xf32>, vector<2x8x8xf32>, vector<2x8x8xf32> -> vector<2x8x8xf32>
    %cst_80 = arith.constant -1.000000e+04 : f32
    "tpu.trace_stop"() : () -> ()
    %234 = vector.broadcast %cst_80 : f32 to vector<2x8x8xf32>
    %235 = arith.select %9, %234, %233 : vector<2x8x8xi1>, vector<2x8x8xf32>
    %cst_81 = arith.constant dense<0xFF800000> : vector<2x8xf32>
    %236 = vector.multi_reduction <maximumf>, %235, %cst_81 [2] : vector<2x8x8xf32> to vector<2x8xf32>
    %237 = vector.shape_cast %236 : vector<2x8xf32> to vector<2x8x1xf32>
    %238 = vector.broadcast %237 : vector<2x8x1xf32> to vector<2x8x8xf32>
    %239 = arith.subf %235, %238 : vector<2x8x8xf32>
    %240 = math.exp %239 : vector<2x8x8xf32>
    %cst_82 = arith.constant dense<0.000000e+00> : vector<2x8xf32>
    %241 = vector.multi_reduction <add>, %240, %cst_82 [2] : vector<2x8x8xf32> to vector<2x8xf32>
    %242 = vector.shape_cast %241 : vector<2x8xf32> to vector<2x8x1xf32>
    %243 = tpu.reciprocal %242 {approx = true} : vector<2x8x1xf32> -> vector<2x8x1xf32>
    %244 = vector.broadcast %243 : vector<2x8x1xf32> to vector<2x8x8xf32>
    %245 = arith.mulf %240, %244 : vector<2x8x8xf32>
    %246 = vector.extract_strided_slice %168 {offsets = [0, 0, 24], sizes = [2, 8, 8], strides = [1, 1, 1]} : vector<2x8x32xf32> to vector<2x8x8xf32>
    "tpu.trace_start"() <{level = 10 : i32, message = "bqk,bkd->bqd"}> : () -> ()
    %cst_83 = arith.constant dense<0.000000e+00> : vector<2x8x8xf32>
    %247 = tpu.matmul %245, %246, %cst_83 {dimension_numbers = #tpu.dot_dimension_numbers<[2], [1], [1], [2], [0, 0, 0, 1, 1, 2], [0], [0]>} : vector<2x8x8xf32>, vector<2x8x8xf32>, vector<2x8x8xf32> -> vector<2x8x8xf32>
    "tpu.trace_stop"() : () -> ()
    %248 = vector.shape_cast %247 : vector<2x8x8xf32> to vector<16x8xf32>
    %249 = vector.extract_strided_slice %24 {offsets = [24, 0], sizes = [8, 32], strides = [1, 1]} : vector<32x32xf32> to vector<8x32xf32>
    %cst_84 = arith.constant dense<0.000000e+00> : vector<16x32xf32>
    %250 = tpu.matmul %248, %249, %cst_84 {dimension_numbers = #tpu.dot_dimension_numbers<[1], [0], [0], [1], [0, 0, 1, 1], [], []>} : vector<16x8xf32>, vector<8x32xf32>, vector<16x32xf32> -> vector<16x32xf32>
    %251 = arith.addf %230, %250 : vector<16x32xf32>
    %252 = vector.broadcast %36 : vector<1x32xf32> to vector<16x32xf32>
    %253 = arith.addf %251, %252 : vector<16x32xf32>
    %254 = arith.addf %253, %157 : vector<16x32xf32>
    %cst_85 = arith.constant dense<0.000000e+00> : vector<16xf32>
    %255 = vector.multi_reduction <add>, %254, %cst_85 [1] : vector<16x32xf32> to vector<16xf32>
    %256 = vector.shape_cast %255 : vector<16xf32> to vector<16x1xf32>
    %cst_86 = arith.constant 3.200000e+01 : f32
    %257 = vector.broadcast %cst_86 : f32 to vector<16x1xf32>
    %258 = arith.divf %256, %257 : vector<16x1xf32>
    %259 = vector.broadcast %258 : vector<16x1xf32> to vector<16x32xf32>
    %260 = arith.subf %254, %259 : vector<16x32xf32>
    %261 = arith.mulf %260, %260 : vector<16x32xf32>
    %cst_87 = arith.constant dense<0.000000e+00> : vector<16xf32>
    %262 = vector.multi_reduction <add>, %261, %cst_87 [1] : vector<16x32xf32> to vector<16xf32>
    %263 = vector.shape_cast %262 : vector<16xf32> to vector<16x1xf32>
    %cst_88 = arith.constant 3.200000e+01 : f32
    %264 = vector.broadcast %cst_88 : f32 to vector<16x1xf32>
    %265 = arith.divf %263, %264 : vector<16x1xf32>
    %266 = vector.broadcast %258 : vector<16x1xf32> to vector<16x32xf32>
    %267 = arith.subf %254, %266 : vector<16x32xf32>
    %268 = vector.broadcast %37 : vector<1x32xf32> to vector<16x32xf32>
    %269 = arith.mulf %268, %267 : vector<16x32xf32>
    %cst_89 = arith.constant 9.99999996E-13 : f32
    %270 = vector.broadcast %cst_89 : f32 to vector<16x1xf32>
    %271 = arith.addf %265, %270 : vector<16x1xf32>
    %272 = math.rsqrt %271 : vector<16x1xf32>
    %273 = vector.broadcast %272 : vector<16x1xf32> to vector<16x32xf32>
    %274 = arith.mulf %269, %273 : vector<16x32xf32>
    %275 = vector.broadcast %38 : vector<1x32xf32> to vector<16x32xf32>
    %276 = arith.addf %274, %275 : vector<16x32xf32>
    %cst_90 = arith.constant dense<0.000000e+00> : vector<16x64xf32>
    %277 = tpu.matmul %276, %27, %cst_90 {dimension_numbers = #tpu.dot_dimension_numbers<[1], [0], [0], [1], [0, 0, 1, 1], [], []>} : vector<16x32xf32>, vector<32x64xf32>, vector<16x64xf32> -> vector<16x64xf32>
    %278 = vector.broadcast %39 : vector<1x64xf32> to vector<16x64xf32>
    %279 = arith.addf %277, %278 : vector<16x64xf32>
    %cst_91 = arith.constant 0.000000e+00 : f32
    %280 = vector.broadcast %cst_91 : f32 to vector<16x64xf32>
    %281 = arith.maximumf %279, %280 : vector<16x64xf32>
    %cst_92 = arith.constant dense<0.000000e+00> : vector<16x32xf32>
    %282 = tpu.matmul %281, %28, %cst_92 {dimension_numbers = #tpu.dot_dimension_numbers<[1], [0], [0], [1], [0, 0, 1, 1], [], []>} : vector<16x64xf32>, vector<64x32xf32>, vector<16x32xf32> -> vector<16x32xf32>
    %283 = vector.broadcast %40 : vector<1x32xf32> to vector<16x32xf32>
    %284 = arith.addf %282, %283 : vector<16x32xf32>
    %c0_93 = arith.constant 0 : index
    %c0_94 = arith.constant 0 : index
    %285 = vector.load %arg8[%c0_93, %c0_94] : memref<16x32xf32, #tpu.memory_space<vmem>>, vector<16x32xf32>
    tpu.vector_store %arg8[%c0_93, %c0_94], %284 {strides = array<i32>} : memref<16x32xf32, #tpu.memory_space<vmem>>, vector<16x32xf32>,
    return
  }
  func.func @transform_0(%arg0: i32) -> (i32, i32, i32) {
    %c0_i32 = arith.constant 0 : i32
    %c0_i32_0 = arith.constant 0 : i32
    %c0_i32_1 = arith.constant 0 : i32
    %c0_i32_2 = arith.constant 0 : i32
    return %c0_i32, %c0_i32_0, %c0_i32_1 : i32, i32, i32
  }
  func.func @transform_1(%arg0: i32) -> (i32, i32, i32) {
    %c0_i32 = arith.constant 0 : i32
    %c0_i32_0 = arith.constant 0 : i32
    %c0_i32_1 = arith.constant 0 : i32
    %c0_i32_2 = arith.constant 0 : i32
    return %c0_i32, %c0_i32_0, %c0_i32_1 : i32, i32, i32
  }
  func.func @transform_2(%arg0: i32) -> (i32, i32, i32) {
    %c0_i32 = arith.constant 0 : i32
    %c0_i32_0 = arith.constant 0 : i32
    %c0_i32_1 = arith.constant 0 : i32
    %c0_i32_2 = arith.constant 0 : i32
    return %c0_i32, %c0_i32_0, %c0_i32_1 : i32, i32, i32
  }
  func.func @transform_3(%arg0: i32) -> (i32, i32, i32) {
    %c0_i32 = arith.constant 0 : i32
    %c0_i32_0 = arith.constant 0 : i32
    %c0_i32_1 = arith.constant 0 : i32
    %c0_i32_2 = arith.constant 0 : i32
    return %c0_i32, %c0_i32_0, %c0_i32_1 : i32, i32, i32
  }
  func.func @transform_4(%arg0: i32) -> (i32, i32, i32) {
    %c0_i32 = arith.constant 0 : i32
    %c0_i32_0 = arith.constant 0 : i32
    %c0_i32_1 = arith.constant 0 : i32
    %c0_i32_2 = arith.constant 0 : i32
    return %c0_i32, %c0_i32_0, %c0_i32_1 : i32, i32, i32
  }
  func.func @transform_5(%arg0: i32) -> (i32, i32) {
    %c0_i32 = arith.constant 0 : i32
    %c0_i32_0 = arith.constant 0 : i32
    %c0_i32_1 = arith.constant 0 : i32
    return %c0_i32, %c0_i32_0 : i32, i32
  }
  func.func @transform_6(%arg0: i32) -> (i32, i32) {
    %c0_i32 = arith.constant 0 : i32
    %c0_i32_0 = arith.constant 0 : i32
    %c0_i32_1 = arith.constant 0 : i32
    return %c0_i32, %c0_i32_0 : i32, i32
  }
  func.func @transform_7(%arg0: i32) -> (i32, i32) {
    %c0_i32 = arith.constant 0 : i32
    %c0_i32_0 = arith.constant 0 : i32
    %c0_i32_1 = arith.constant 0 : i32
    return %c0_i32, %c0_i32_0 : i32, i32
  }
}

</mosaic_0001>

<bundles_post_ra>
// kernel: tpu_custom_call.1
= control target key start
LH: loop header
LB: loop body
LE: loop exit
PB: predicated region body
PF: predicated region fallthrough
CT: control target
= control target key end

     0   :  { %12 = vsyncpa [#allocation3], 0  ;;  %s5151_s0 = inlined_call_operand.vmem [shape: f32[2,8,32], index: 0, kind: input, shape index: {}]   ;;  %s5152_s1 = inlined_call_operand.vmem [shape: f32[2,8,32], index: 1, kind: input, shape index: {}]   ;;  %s5153_s2 = inlined_call_operand.vmem [shape: f32[2,8,8], index: 2, kind: input, shape index: {}]   ;;  %s5154_s3 = inlined_call_operand.vmem [shape: f32[2,8,8], index: 3, kind: input, shape index: {}]   ;;  %s5155_s4 = inlined_call_operand.hbm [shape: f32[6,32,128], index: 4, kind: input, shape index: {}]   ;;  %s5156_s5 = inlined_call_operand.vmem [shape: f32[64,32], index: 5, kind: input, shape index: {}]   ;;  %s5157_s6 = inlined_call_operand.vmem [shape: f32[16,128], index: 6, kind: input, shape index: {}]   ;;  %s5158_s7 = inlined_call_operand.hbm [shape: f32[16,32], index: 7, kind: output, shape index: {}]  }
   0x1   :  { %13 = vsyncpa [#allocation4], 0  ;;  %s4597_s24 = smov [#allocation2]   ;;  %s4549_s28 = scalar_lea.hbm %s5155_s4, 3072 }
   0x2   :  { %s27_s25 = sshll.u32 %s4597_s24, 4  ;;  %p4550_p0 = scmp.ne.s32.totalorder %s5155_s4, %s4549_s28  ;;  %s28_s25 = int_to_ptr.vmem [resolvable:$true] %s27_s25 }
   0x3   :  { %p4553_p1 = scmp.lt.u32.totalorder %s4549_s28, %s5155_s4 }
   0x5   :  { %p4555_p2 = pnand %p4553_p1, %p4550_p0 }
   0x7   :  { %4558 = shalt.err (!%p4555_p2)
}
   0x8   :  { %s4559_s10 = scalar_lea.vmem %s28_s25, 3072  ;;  %p4564_p4 = scmp.lt.s32.totalorder %s28_s25, %s28_s25 }
   0x9   :  { %p4560_p3 = scmp.ne.s32.totalorder %s28_s25, %s4559_s10  ;;  %p4565_p5 = scmp.lt.s32.totalorder %s4559_s10, %s4559_s10 }
   0xb   :  { %p4566_p6 = por %p4565_p5, %p4564_p4 }
   0xd   :  { %p4567_p7 = pnand %p4566_p6, %p4560_p3 }
   0xf   :  { %4570 = shalt.err (!%p4567_p7)
}
  0x10   :  { %s4598_s11 = smov 128   ;;  %s4599_s12 = smov 8  }
  0x11   :  { %33 = dma.hbm_to_vmem [thread:$0]  %s5155_s4, 3072, %s28_s25, [#allocation3], %s4598_s11, %s4598_s11, %s4599_s12  }
  0x12   :  { %4593 = dma.done.wait [#allocation3], 3072  }
  0x13   :  { %4594 = vsyncadd [#allocation3], 4294964224  ;;  %vm96_vm0 = vcmask 261120   ;;  %v53_v0 = vld [vmem:[#allocation2] sm:$0xff]  ;;  %v54_v1 = vld [vmem:[#allocation2 + $0x8] sm:$0xff]  ;;  %v4600_v8 = vmov 0.0   ;;  %v92_v9 = vlaneseq }
  0x14   :  { %v55_v2 = vld [vmem:[#allocation2 + $0x10] sm:$0xff]  ;;  %v4399_v3 = vpack.c.bf16 %v54_v1, %v53_v0  ;;  %v56_v4 = vld [vmem:[#allocation2 + $0x18] sm:$0xff]  ;;  %v4672_v5 = vld [vmem:[%s5151_s0] sm:$0xff]  ;;  %4157 = vmatprep.subr.mxu0 %v4600_v8  ;;  %vm4601_vm1 = vmmov 0   ;;  %s4602_s19 = smov 96   ;;  %s4603_s20 = smov 64  }
  0x15   :  { %v4403_v6 = vpack.c.bf16 %v56_v4, %v55_v2  ;;  %4144 = vmatprep.mubr.msk.f32.mxu1 %vm96_vm0, %v4672_v5  ;;  %v4679_v7 = vld [vmem:[%s5151_s0 + $0x8] sm:$0xff]  ;;  %v4685_v10 = vshrl.u32 %v92_v9, 7  ;;  %4159 = vmatprep.mubr.msk.f32.mxu0 %vm4601_vm1, %v4600_v8  ;;  %v4695_v12 = vld [vmem:[%s5157_s6] sm:$0xff]  ;;  %s4604_s21 = smov 120   ;;  %vm181_vm2 = vcmask 64512   ;;  %s4606_s26 = smov 80  }
  0x16   :  { %4400 = vmatprep.subr.bf16.mxu1 %v4399_v3  ;;  %v4728_v21 = vld [vmem:[%s5153_s2] sm:$0xff]  ;;  %v4734_v22 = vld [vmem:[%s5153_s2 + $0x8] sm:$0xff]  ;;  %s4605_s2 = smov 88   ;;  %s4607_s27 = smov 56   ;;  %vm3839_vm7 = vcmask 523264  }
  0x17   :  { %4402 = vmatpush3.bf16.msra.mxu1 %v4399_v3  ;;  %v94_v11 = vsub.s32 0, %v4685_v10  ;;  %vm47_vm3 = vcmp.eq.f32.partialorder %v4728_v21, 0.0  ;;  %vm48_vm4 = vcmp.eq.f32.partialorder %v4734_v22, 0.0  ;;  %s4608_s28 = smov 112   ;;  %s4609_s29 = smov 48  }
  0x18   :  { %4404 = vmatprep.subr.bf16.mxu1 %v4403_v6  ;;  %s4610_s30 = smov 72   ;;  %s4611_s8 = smov 104  }
  0x19   :  { %v95_v13 = vrot.slane %v4695_v12, %v94_v11  ;;  %s4612_s9 = smov 40   ;;  %s4613_s13 = smov [#allocation5]  }
  0x1b   :  { %4406 = vmatpush3.bf16.msra.mxu1 %v4403_v6 }
  0x1c   :  { %4147 = vmatprep.subr.mxu1 %v4600_v8 }
  0x1e   :  { %4145 = vmatmul.mubr.msk.f32.vlgmr.msra.gmra.mrb[0].mxu1 %vm96_vm0, %v4679_v7 }
  0x1f   :  { %4149 = vmatprep.mubr.msk.f32.mxu1 %vm4601_vm1, %v4600_v8 }
  0xf1   :  { %v4146_v14 = vpop.f32.mrb[0].mxu1 }
  0xf2   :  { %v169_v15 = vpop.f32.mrb[1].mxu1  ;;  %v4704_v17 = vadd.f32 %v4146_v14, %v95_v13 }
  0xf3   :  { %v4700_v16 = vadd.f32 %v169_v15, %v95_v13 }
  0xf5   :  { %179 = vrot.lane.b32.xlu0 %v4700_v16, %s4602_s19 }
  0xf9   :  { %257 = vrot.lane.b32.xlu0 %v4704_v17, %s4602_s19 }
  0xfd   :  { %433 = vrot.lane.b32.xlu0 %v4704_v17, %s4603_s20 }
 0x101   :  { %587 = vrot.lane.b32.xlu0 %v4704_v17, %s4604_s21 }
 0x167   :  { %v180_v18 = vpop.permute.xlu0 %179 }
 0x168   :  { %4148 = vmatpush3.xpose.msk.msra.mxu1 %vm181_vm2, %v180_v18 }
 0x169   :  { %4152 = vmatprep.subr.mxu1 %v4600_v8 }
 0x16b   :  { %4150 = vmatmul.mubr.msk.f32.vlgmr.msra.gmra.mrb[2].mxu1 %vm181_vm2, %v4700_v16  ;;  %v258_v19 = vpop.permute.xlu0 %257 }
 0x16c   :  { %4153 = vmatpush3.xpose.msk.msra.mxu1 %vm181_vm2, %v258_v19  ;;  %4154 = vmatprep.mubr.msk.f32.mxu1 %vm4601_vm1, %v4600_v8 }
 0x16d   :  { %4162 = vmatprep.subr.mxu1 %v4600_v8 }
 0x16f   :  { %4155 = vmatmul.mubr.msk.f32.vlgmr.msra.gmra.mrb[4].mxu1 %vm181_vm2, %v4704_v17  ;;  %v434_v20 = vpop.permute.xlu0 %433 }
 0x170   :  { %4163 = vmatpush3.msra.mxu1 %v434_v20  ;;  %4164 = vmatprep.mubr.msk.f32.mxu1 %vm4601_vm1, %v4600_v8 }
 0x171   :  { %4172 = vmatprep.subr.mxu1 %v4600_v8 }
 0x173   :  { %v588_v31 = vpop.permute.xlu0 %587 }
 0x23e   :  { %v252_v23 = vpop.f32.mrb[2].mxu1 }
 0x23f   :  { %v333_v24 = vsel %vm47_vm3, -10000.0, %v252_v23  ;;  %v4151_v25 = vpop.f32.mrb[3].mxu1 }
 0x240   :  { %v335_v26 = vsel %vm181_vm2, %v333_v24, -inf }
 0x241   :  { %336 = vmax.xlane.f32.xlu0 %v335_v26 }
 0x242   :  { %v329_v27 = vpop.f32.mrb[4].mxu1 }
 0x243   :  { %v334_v28 = vsel %vm48_vm4, -10000.0, %v329_v27  ;;  %v4156_v29 = vpop.f32.mrb[5].mxu1 }
 0x244   :  { %v338_v30 = vsel %vm181_vm2, %v334_v28, -inf }
 0x245   :  { %339 = vmax.xlane.f32.xlu1 %v338_v30 }
 0x257   :  { %357 = vrot.lane.b32.xlu0 %v4700_v16, %s4603_s20 }
 0x25b   :  { %509 = vrot.lane.b32.xlu0 %v4700_v16, %s4604_s21 }
 0x2ce   :  { %v337_v32 = vpop.xlane.xlu0 %336 }
 0x2cf   :  { %v341_v39 = vsub.f32 %v333_v24, %v337_v32  ;;  %v59_v32 = vld [vmem:[#allocation2 + $0x28] sm:$0xff] }
 0x2d1   :  { %v343_v40 = vmul.f32 1.442695, %v341_v39 }
 0x2d2   :  { %v340_v33 = vpop.xlane.xlu1 %339  ;;  %v358_v34 = vpop.permute.xlu0 %357 }
 0x2d3   :  { %v342_v35 = vsub.f32 %v334_v28, %v340_v33  ;;  %4158 = vmatpush3.msra.mxu0 %v358_v34  ;;  %v58_v33 = vld [vmem:[#allocation2 + $0x20] sm:$0xff] }
 0x2d4   :  { %4167 = vmatprep.subr.mxu0 %v4600_v8 }
 0x2d5   :  { %v345_v36 = vmul.f32 1.442695, %v342_v35 }
 0x2d6   :  { %v510_v51 = vpop.permute.xlu0 %509 }
 0x2d7   :  { %4476 = vpow2.f32 %v345_v36 }
 0x2d8   :  { %4478 = vpow2.f32 %v343_v40 }
 0x2e1   :  { %v4477_v37 = vpop.eup %4476 }
 0x2e2   :  { %v350_v38 = vsel %vm181_vm2, %v4477_v37, 0.0  ;;  %v4479_v41 = vpop.eup %4478 }
 0x2e3   :  { %351 = vadd.xlane.f32.xlu1 %v350_v38  ;;  %v347_v42 = vsel %vm181_vm2, %v4479_v41, 0.0 }
 0x2f4   :  { %589 = vrot.lane.b32.xlu1 %v4704_v17, %s4605_s2 }
 0x318   :  { %348 = vadd.xlane.f32.xlu1 %v347_v42 }
 0x329   :  { %511 = vrot.lane.b32.xlu1 %v4700_v16, %s4605_s2 }
 0x32d   :  { %1005 = vrot.lane.b32.xlu1 %v4700_v16, %s4606_s26 }
 0x370   :  { %v352_v43 = vpop.xlane.xlu1 %351 }
 0x371   :  { %4480 = vrcp.f32 %v352_v43 }
 0x374   :  { %v590_v46 = vpop.permute.xlu1 %589 }
 0x37b   :  { %v4481_v44 = vpop.eup %4480 }
 0x37c   :  { %v356_v45 = vmul.f32 %v4481_v44, %v4477_v37 }
 0x37e   :  { %4165 = vmatmul.mubr.msk.f32.vlgmr.msra.gmra.mrb[6].mxu1 %vm181_vm2, %v356_v45 }
 0x37f   :  { %4173 = vmatpush3.xpose.msk.msra.mxu1 %vm181_vm2, %v590_v46  ;;  %4174 = vmatprep.mubr.msk.f32.mxu1 %vm4601_vm1, %v4600_v8 }
 0x380   :  { %4182 = vmatprep.subr.mxu1 %v4600_v8 }
 0x382   :  { %4175 = vmatmul.mubr.msk.f32.vlgmr.msra.gmra.mrb[8].mxu1 %vm181_vm2, %v588_v31 }
 0x383   :  { %4184 = vmatprep.mubr.msk.f32.mxu1 %vm4601_vm1, %v4600_v8 }
 0x3a5   :  { %v349_v47 = vpop.xlane.xlu1 %348 }
 0x3a6   :  { %4482 = vrcp.f32 %v349_v47 }
 0x3a9   :  { %v512_v50 = vpop.permute.xlu1 %511 }
 0x3ad   :  { %v1006_v24 = vpop.permute.xlu1 %1005 }
 0x3b0   :  { %v4483_v48 = vpop.eup %4482 }
 0x3b1   :  { %v355_v49 = vmul.f32 %v4483_v48, %v4479_v41 }
 0x3b3   :  { %4160 = vmatmul.mubr.msk.f32.vlgmr.msra.gmra.mrb[0].mxu0 %vm181_vm2, %v355_v49 }
 0x3b4   :  { %4168 = vmatpush3.xpose.msk.msra.mxu0 %vm181_vm2, %v512_v50  ;;  %4169 = vmatprep.mubr.msk.f32.mxu0 %vm4601_vm1, %v4600_v8 }
 0x3b5   :  { %4177 = vmatprep.subr.mxu0 %v4600_v8 }
 0x3b7   :  { %4170 = vmatmul.mubr.msk.f32.vlgmr.msra.gmra.mrb[2].mxu0 %vm181_vm2, %v510_v51 }
 0x3b8   :  { %4179 = vmatprep.mubr.msk.f32.mxu0 %vm4601_vm1, %v4600_v8 }
 0x451   :  { %v4772_v52 = vpop.f32.mrb[6].mxu1 }
 0x452   :  { %v4166_v53 = vpop.f32.mrb[7].mxu1 }
 0x455   :  { %v661_v54 = vpop.f32.mrb[8].mxu1 }
 0x456   :  { %v666_v55 = vsel %vm48_vm4, -10000.0, %v661_v54  ;;  %v4176_v56 = vpop.f32.mrb[9].mxu1 }
 0x457   :  { %v670_v57 = vsel %vm181_vm2, %v666_v55, -inf }
 0x458   :  { %671 = vmax.xlane.f32.xlu0 %v670_v57 }
 0x46e   :  { %765 = vrot.lane.b32.xlu0 %v4704_v17, %s4607_s27 }
 0x472   :  { %1003 = vrot.lane.b32.xlu0 %v4700_v16, %s4608_s28 }
 0x476   :  { %1083 = vrot.lane.b32.xlu0 %v4704_v17, %s4606_s26 }
 0x486   :  { %v4782_v58 = vpop.f32.mrb[0].mxu0 }
 0x487   :  { %v4161_v59 = vpop.f32.mrb[1].mxu0 }
 0x48a   :  { %v583_v60 = vpop.f32.mrb[2].mxu0 }
 0x48b   :  { %v4171_v61 = vpop.f32.mrb[3].mxu0  ;;  %v665_v62 = vsel %vm47_vm3, -10000.0, %v583_v60 }
 0x48c   :  { %v667_v63 = vsel %vm181_vm2, %v665_v62, -inf }
 0x495   :  { %668 = vmax.xlane.f32.xlu0 %v667_v63 }
 0x4ab   :  { %689 = vrot.lane.b32.xlu0 %v4700_v16, %s4607_s27 }
 0x4af   :  { %1183 = vrot.lane.b32.xlu0 %v4700_v16, %s4609_s29 }
 0x4b3   :  { %1420 = vrot.lane.b32.xlu0 %v4700_v16, %s4610_s30 }
 0x4b7   :  { %1498 = vrot.lane.b32.xlu0 %v4704_v17, %s4610_s30 }
 0x4bb   :  { %1418 = vrot.lane.b32.xlu0 %v4700_v16, %s4611_s8 }
 0x4bf   :  { %1496 = vrot.lane.b32.xlu0 %v4704_v17, %s4611_s8 }
 0x4e5   :  { %v672_v0 = vpop.xlane.xlu0 %671 }
 0x4e6   :  { %v674_v1 = vsub.f32 %v666_v55, %v672_v0 }
 0x4e8   :  { %v677_v2 = vmul.f32 1.442695, %v674_v1 }
 0x4e9   :  { %v766_v3 = vpop.permute.xlu0 %765 }
 0x4ea   :  { %4484 = vpow2.f32 %v677_v2  ;;  %4183 = vmatpush3.msra.mxu1 %v766_v3 }
 0x4eb   :  { %4197 = vmatprep.subr.mxu1 %v4600_v8 }
 0x4ed   :  { %v1004_v9 = vpop.permute.xlu0 %1003 }
 0x4f1   :  { %v1084_v13 = vpop.permute.xlu0 %1083 }
 0x4f4   :  { %v4485_v4 = vpop.eup %4484 }
 0x4f5   :  { %v682_v6 = vsel %vm181_vm2, %v4485_v4, 0.0 }
 0x4f6   :  { %683 = vadd.xlane.f32.xlu1 %v682_v6 }
 0x507   :  { %1081 = vrot.lane.b32.xlu1 %v4704_v17, %s4608_s28 }
 0x522   :  { %v669_v14 = vpop.xlane.xlu0 %668 }
 0x523   :  { %v673_v15 = vsub.f32 %v665_v62, %v669_v14 }
 0x525   :  { %v675_v18 = vmul.f32 1.442695, %v673_v15 }
 0x526   :  { %v690_v19 = vpop.permute.xlu0 %689 }
 0x527   :  { %4486 = vpow2.f32 %v675_v18  ;;  %4178 = vmatpush3.msra.mxu0 %v690_v19 }
 0x528   :  { %4187 = vmatprep.subr.mxu0 %v59_v32 }
 0x52a   :  { %v1184_v46 = vpop.permute.xlu0 %1183 }
 0x52e   :  { %v1421_v61 = vpop.permute.xlu0 %1420 }
 0x531   :  { %v4487_v20 = vpop.eup %4486 }
 0x532   :  { %v679_v23 = vsel %vm181_vm2, %v4487_v20, 0.0  ;;  %v1499_v1 = vpop.permute.xlu0 %1498 }
 0x533   :  { %680 = vadd.xlane.f32.xlu1 %v679_v23 }
 0x536   :  { %v1419_v3 = vpop.permute.xlu0 %1418 }
 0x53a   :  { %v1497_v14 = vpop.permute.xlu0 %1496 }
 0x583   :  { %v684_v25 = vpop.xlane.xlu1 %683 }
 0x584   :  { %4488 = vrcp.f32 %v684_v25 }
 0x587   :  { %v1082_v28 = vpop.permute.xlu1 %1081 }
 0x58e   :  { %v4489_v26 = vpop.eup %4488 }
 0x58f   :  { %v688_v27 = vmul.f32 %v4489_v26, %v4485_v4 }
 0x591   :  { %4185 = vmatmul.mubr.msk.f32.vlgmr.msra.gmra.mrb[10].mxu1 %vm181_vm2, %v688_v27 }
 0x592   :  { %4198 = vmatpush3.xpose.msk.msra.mxu1 %vm181_vm2, %v1006_v24  ;;  %4199 = vmatprep.mubr.msk.f32.mxu1 %vm4601_vm1, %v4600_v8 }
 0x593   :  { %4202 = vmatprep.subr.mxu1 %v4600_v8 }
 0x595   :  { %4200 = vmatmul.mubr.msk.f32.vlgmr.msra.gmra.mrb[12].mxu1 %vm181_vm2, %v1004_v9 }
 0x596   :  { %4203 = vmatpush3.xpose.msk.msra.mxu1 %vm181_vm2, %v1084_v13  ;;  %4204 = vmatprep.mubr.msk.f32.mxu1 %vm4601_vm1, %v4600_v8 }
 0x597   :  { %4212 = vmatprep.subr.mxu1 %v4600_v8 }
 0x599   :  { %4205 = vmatmul.mubr.msk.f32.vlgmr.msra.gmra.mrb[14].mxu1 %vm181_vm2, %v1082_v28 }
 0x59a   :  { %4214 = vmatprep.mubr.msk.f32.mxu1 %vm4601_vm1, %v4600_v8 }
 0x5c0   :  { %v681_v29 = vpop.xlane.xlu1 %680 }
 0x5c1   :  { %4490 = vrcp.f32 %v681_v29 }
 0x5cb   :  { %v4491_v30 = vpop.eup %4490 }
 0x5cc   :  { %v687_v31 = vmul.f32 %v4491_v30, %v4487_v20 }
 0x5ce   :  { %4180 = vmatmul.mubr.msk.f32.vlgmr.msra.gmra.mrb[4].mxu0 %vm181_vm2, %v687_v31 }
 0x5cf   :  { %4188 = vmatpush3.msra.mxu0 %v59_v32 }
 0x5d0   :  { %4192 = vmatprep.subr.mxu0 %v58_v33 }
 0x664   :  { %v837_v34 = vpop.f32.mrb[10].mxu1 }
 0x665   :  { %v4186_v35 = vpop.f32.mrb[11].mxu1 }
 0x668   :  { %v1077_v36 = vpop.f32.mrb[12].mxu1 }
 0x669   :  { %v1159_v37 = vsel %vm47_vm3, -10000.0, %v1077_v36  ;;  %v4201_v38 = vpop.f32.mrb[13].mxu1 }
 0x66a   :  { %v1161_v39 = vsel %vm181_vm2, %v1159_v37, -inf }
 0x66b   :  { %1162 = vmax.xlane.f32.xlu1 %v1161_v39 }
 0x66c   :  { %v1155_v40 = vpop.f32.mrb[14].mxu1 }
 0x66d   :  { %v1160_v41 = vsel %vm48_vm4, -10000.0, %v1155_v40  ;;  %v4206_v42 = vpop.f32.mrb[15].mxu1 }
 0x66e   :  { %v1164_v43 = vsel %vm181_vm2, %v1160_v41, -inf }
 0x66f   :  { %1165 = vmax.xlane.f32.xlu1 %v1164_v43 }
 0x6a1   :  { %v761_v44 = vpop.f32.mrb[4].mxu0 }
 0x6a2   :  { %v4181_v45 = vpop.f32.mrb[5].mxu0  ;;  %4189 = vmatprep.mubr.msk.f32.mxu0 %vm181_vm2, %v761_v44 }
 0x6a3   :  { %4190 = vmatmul.mubr.msk.f32.vlgmr.msra.gmra.mrb[6].mxu0 %vm181_vm2, %v837_v34 }
 0x6a4   :  { %4194 = vmatprep.mubr.msk.f32.mxu0 %vm181_vm2, %v4782_v58  ;;  %4193 = vmatpush3.msra.mxu0 %v58_v33 }
 0x6a5   :  { %4207 = vmatprep.subr.mxu0 %v4600_v8 }
 0x6ab   :  { %4195 = vmatmul.mubr.msk.f32.vlgmr.msra.gmra.mrb[6].mxu0 %vm181_vm2, %v4772_v52  ;;  %v60_v52 = vld [vmem:[#allocation2 + $0x30] sm:$0xff] }
 0x6ac   :  { %4208 = vmatpush3.msra.mxu0 %v1184_v46  ;;  %4209 = vmatprep.mubr.msk.f32.mxu0 %vm4601_vm1, %v4600_v8 }
 0x6ad   :  { %4217 = vmatprep.subr.mxu0 %v60_v52 }
 0x6f8   :  { %v1163_v47 = vpop.xlane.xlu1 %1162 }
 0x6f9   :  { %v1167_v48 = vsub.f32 %v1159_v37, %v1163_v47 }
 0x6fb   :  { %v1169_v49 = vmul.f32 1.442695, %v1167_v48 }
 0x6fc   :  { %v1166_v50 = vpop.xlane.xlu1 %1165 }
 0x6fd   :  { %4492 = vpow2.f32 %v1169_v49  ;;  %v1168_v51 = vsub.f32 %v1160_v41, %v1166_v50 }
 0x6ff   :  { %v1171_v53 = vmul.f32 1.442695, %v1168_v51 }
 0x701   :  { %4494 = vpow2.f32 %v1171_v53 }
 0x707   :  { %v4493_v54 = vpop.eup %4492 }
 0x708   :  { %v1173_v55 = vsel %vm181_vm2, %v4493_v54, 0.0 }
 0x709   :  { %1174 = vadd.xlane.f32.xlu1 %v1173_v55 }
 0x70b   :  { %v4495_v56 = vpop.eup %4494 }
 0x70c   :  { %v1176_v57 = vsel %vm181_vm2, %v4495_v56, 0.0 }
 0x70d   :  { %1177 = vadd.xlane.f32.xlu1 %v1176_v57 }
 0x71e   :  { %1259 = vrot.lane.b32.xlu1 %v4704_v17, %s4609_s29 }
 0x796   :  { %v1175_v58 = vpop.xlane.xlu1 %1174 }
 0x797   :  { %4496 = vrcp.f32 %v1175_v58 }
 0x79a   :  { %v1178_v59 = vpop.xlane.xlu1 %1177 }
 0x79b   :  { %4498 = vrcp.f32 %v1178_v59 }
 0x79e   :  { %v1260_v60 = vpop.permute.xlu1 %1259 }
 0x79f   :  { %4213 = vmatpush3.msra.mxu1 %v1260_v60 }
 0x7a0   :  { %4222 = vmatprep.subr.mxu1 %v4600_v8 }
 0x7a1   :  { %v4497_v62 = vpop.eup %4496 }
 0x7a2   :  { %v1181_v63 = vmul.f32 %v4497_v62, %v4493_v54 }
 0x7a4   :  { %4210 = vmatmul.mubr.msk.f32.vlgmr.msra.gmra.mrb[8].mxu0 %vm181_vm2, %v1181_v63 }
 0x7a5   :  { %v4499_v0 = vpop.eup %4498  ;;  %4218 = vmatpush3.msra.mxu0 %v60_v52 }
 0x7a6   :  { %v1182_v2 = vmul.f32 %v4499_v0, %v4495_v56  ;;  %4227 = vmatprep.subr.mxu0 %v4600_v8 }
 0x7a8   :  { %4215 = vmatmul.mubr.msk.f32.vlgmr.msra.gmra.mrb[16].mxu1 %vm181_vm2, %v1182_v2 }
 0x7a9   :  { %4223 = vmatpush3.xpose.msk.msra.mxu1 %vm181_vm2, %v1421_v61  ;;  %4224 = vmatprep.mubr.msk.f32.mxu1 %vm4601_vm1, %v4600_v8 }
 0x7aa   :  { %4232 = vmatprep.subr.mxu1 %v4600_v8 }
 0x7ac   :  { %4225 = vmatmul.mubr.msk.f32.vlgmr.msra.gmra.mrb[18].mxu1 %vm181_vm2, %v1419_v3  ;;  %v63_v3 = vld [vmem:[#allocation2 + $0x40] sm:$0xff] }
 0x7ad   :  { %4234 = vmatprep.mubr.msk.f32.mxu1 %vm4601_vm1, %v4600_v8 }
 0x877   :  { %v1255_v4 = vpop.f32.mrb[8].mxu0 }
 0x878   :  { %v4211_v6 = vpop.f32.mrb[9].mxu0  ;;  %4219 = vmatprep.mubr.msk.f32.mxu0 %vm181_vm2, %v1255_v4  ;;  %v64_v4 = vld [vmem:[#allocation2 + $0x48] sm:$0xff] }
 0x879   :  { %v70_v6 = vld [vmem:[#allocation2 + $0x70] sm:$0xff] }
 0x87b   :  { %v1331_v9 = vpop.f32.mrb[16].mxu1 }
 0x87c   :  { %v4216_v13 = vpop.f32.mrb[17].mxu1  ;;  %4220 = vmatmul.mubr.msk.f32.vlgmr.msra.gmra.mrb[6].mxu0 %vm181_vm2, %v1331_v9  ;;  %v4407_v9 = vpack.c.bf16 %v64_v4, %v63_v3 }
 0x87d   :  { %4228 = vmatpush3.xpose.msk.msra.mxu0 %vm181_vm2, %v1499_v1  ;;  %4229 = vmatprep.mubr.msk.f32.mxu0 %vm4601_vm1, %v4600_v8  ;;  %v69_v1 = vld [vmem:[#allocation2 + $0x68] sm:$0xff]  ;;  %v71_v13 = vld [vmem:[#allocation2 + $0x78] sm:$0xff] }
 0x87e   :  { %4237 = vmatprep.subr.mxu0 %v4600_v8 }
 0x87f   :  { %v1492_v15 = vpop.f32.mrb[18].mxu1 }
 0x880   :  { %v1574_v18 = vsel %vm47_vm3, -10000.0, %v1492_v15  ;;  %v4226_v19 = vpop.f32.mrb[19].mxu1  ;;  %4230 = vmatmul.mubr.msk.f32.vlgmr.msra.gmra.mrb[10].mxu0 %vm181_vm2, %v1497_v14  ;;  %v4419_v14 = vpack.c.bf16 %v71_v13, %v70_v6  ;;  %v43_v15 = vld [vmem:[%s5152_s1] sm:$0xff] }
 0x881   :  { %v1576_v20 = vsel %vm181_vm2, %v1574_v18, -inf  ;;  %4239 = vmatprep.mubr.msk.f32.mxu0 %vm4601_vm1, %v4600_v8  ;;  %v66_v19 = vld [vmem:[#allocation2 + $0x58] sm:$0xff] }
 0x882   :  { %1577 = vmax.xlane.f32.xlu1 %v1576_v20 }
 0x90f   :  { %v1578_v23 = vpop.xlane.xlu1 %1577 }
 0x910   :  { %v1582_v24 = vsub.f32 %v1574_v18, %v1578_v23  ;;  %v65_v18 = vld [vmem:[#allocation2 + $0x50] sm:$0xff]  ;;  %v44_v23 = vld [vmem:[%s5152_s1 + $0x8] sm:$0xff] }
 0x911   :  { %v4411_v20 = vpack.c.bf16 %v66_v19, %v65_v18 }
 0x912   :  { %v1584_v25 = vmul.f32 1.442695, %v1582_v24 }
 0x914   :  { %4500 = vpow2.f32 %v1584_v25 }
 0x91e   :  { %v4501_v29 = vpop.eup %4500 }
 0x91f   :  { %v1588_v30 = vsel %vm181_vm2, %v4501_v29, 0.0 }
 0x953   :  { %v1570_v26 = vpop.f32.mrb[10].mxu0 }
 0x954   :  { %v1575_v27 = vsel %vm48_vm4, -10000.0, %v1570_v26  ;;  %v4231_v28 = vpop.f32.mrb[11].mxu0 }
 0x955   :  { %v1579_v21 = vsel %vm181_vm2, %v1575_v27, -inf }
 0x956   :  { %1580 = vmax.xlane.f32.xlu0 %v1579_v21 }
 0x95a   :  { %1589 = vadd.xlane.f32.xlu0 %v1588_v30 }
 0x970   :  { %1598 = vrot.lane.b32.xlu0 %v4700_v16, %s4612_s9  ;;  %v61_v16 = vld [vmem:[#allocation2 + $0x38] sm:$0xff] }
 0x9e3   :  { %v1581_v31 = vpop.xlane.xlu0 %1580 }
 0x9e4   :  { %v1583_v32 = vsub.f32 %v1575_v27, %v1581_v31  ;;  %v1876_v31 = vsub.s32 3, %v4685_v10 }
 0x9e6   :  { %v1586_v33 = vmul.f32 1.442695, %v1583_v32 }
 0x9e7   :  { %v1590_v34 = vpop.xlane.xlu0 %1589 }
 0x9e8   :  { %4502 = vpow2.f32 %v1586_v33 }
 0x9e9   :  { %4504 = vrcp.f32 %v1590_v34 }
 0x9eb   :  { %v1599_v35 = vpop.permute.xlu0 %1598 }
 0x9ec   :  { %4233 = vmatpush3.msra.mxu1 %v1599_v35  ;;  %v1877_v35 = vrot.slane %v4695_v12, %v1876_v31 }
 0x9ed   :  { %4408 = vmatprep.subr.bf16.mxu1 %v4407_v9 }
 0x9f2   :  { %v4503_v22 = vpop.eup %4502 }
 0x9f3   :  { %v4505_v36 = vpop.eup %4504  ;;  %v1591_v37 = vsel %vm181_vm2, %v4503_v22, 0.0 }
 0x9f4   :  { %v1596_v38 = vmul.f32 %v4505_v36, %v4501_v29  ;;  %1592 = vadd.xlane.f32.xlu1 %v1591_v37  ;;  %v1864_v29 = vsub.s32 2, %v4685_v10 }
 0x9f6   :  { %4235 = vmatmul.mubr.msk.f32.vlgmr.msra.gmra.mrb[20].mxu1 %vm181_vm2, %v1596_v38  ;;  %v1865_v30 = vrot.slane %v4695_v12, %v1864_v29 }
 0x9f7   :  { %4410 = vmatpush3.bf16.msra.mxu1 %v4407_v9 }
 0x9f8   :  { %4412 = vmatprep.subr.bf16.mxu1 %v4411_v20 }
 0x9fb   :  { %4414 = vmatpush3.bf16.msra.mxu1 %v4411_v20 }
 0x9fc   :  { %4269 = vmatprep.subr.mxu1 %v4600_v8 }
 0xa05   :  { %1674 = vrot.lane.b32.xlu1 %v4704_v17, %s4612_s9  ;;  %v1835_v17 = vsub.s32 1, %v4685_v10 }
 0xa07   :  { %v1836_v47 = vrot.slane %v4695_v12, %v1835_v17 }
 0xa81   :  { %v1593_v39 = vpop.xlane.xlu1 %1592 }
 0xa82   :  { %4506 = vrcp.f32 %v1593_v39 }
 0xa85   :  { %v1675_v40 = vpop.permute.xlu1 %1674 }
 0xa86   :  { %4238 = vmatpush3.msra.mxu0 %v1675_v40 }
 0xa87   :  { %4242 = vmatprep.subr.mxu0 %v61_v16 }
 0xa8c   :  { %v4507_v41 = vpop.eup %4506 }
 0xa8d   :  { %v1597_v42 = vmul.f32 %v4507_v41, %v4503_v22 }
 0xa8f   :  { %4240 = vmatmul.mubr.msk.f32.vlgmr.msra.gmra.mrb[12].mxu0 %vm181_vm2, %v1597_v42 }
 0xa90   :  { %4243 = vmatpush3.msra.mxu0 %v61_v16  ;;  %v1967_v16 = vsub.s32 5, %v4685_v10 }
 0xa92   :  { %v1968_v40 = vrot.slane %v4695_v12, %v1967_v16 }
 0xac9   :  { %v1670_v43 = vpop.f32.mrb[20].mxu1 }
 0xaca   :  { %v4236_v44 = vpop.f32.mrb[21].mxu1  ;;  %4244 = vmatprep.mubr.msk.f32.mxu0 %vm181_vm2, %v1670_v43 }
 0xb62   :  { %v1746_v45 = vpop.f32.mrb[12].mxu0 }
 0xb63   :  { %v4241_v46 = vpop.f32.mrb[13].mxu0  ;;  %4245 = vmatmul.mubr.msk.f32.vlgmr.msra.gmra.mrb[6].mxu0 %vm181_vm2, %v1746_v45  ;;  %v1882_v45 = vsub.s32 4, %v4685_v10 }
 0xb64   :  { %4266 = vmatprep.mubr.msk.f32.mxu0 %vm96_vm0, %v43_v15 }
 0xb65   :  { %v1883_v46 = vrot.slane %v4695_v12, %v1882_v45  ;;  %v4939_v12 = vld [vmem:[%s5154_s3 + $0x8] sm:$0xff] }
 0xb66   :  { %vm52_vm5 = vcmp.eq.f32.partialorder %v4939_v12, 0.0 }
 0xc36   :  { %v4246_v48 = vpop.f32.mrb[6].mxu0 }
 0xc37   :  { %v1838_v49 = vadd.f32 %v4246_v48, %v1836_v47  ;;  %v1822_v50 = vpop.f32.mrb[7].mxu0 }
 0xc38   :  { %v1837_v51 = vadd.f32 %v1836_v47, %v1822_v50 }
 0xc39   :  { %v1840_v53 = vadd.f32 %v1838_v49, %v4679_v7 }
 0xc3a   :  { %v1839_v54 = vadd.f32 %v1837_v51, %v4672_v5  ;;  %v68_v5 = vld [vmem:[#allocation2 + $0x60] sm:$0xff] }
 0xc3b   :  { %v1844_v55 = vsel %vm96_vm0, %v1840_v53, 0.0  ;;  %v4415_v2 = vpack.c.bf16 %v69_v1, %v68_v5 }
 0xc3c   :  { %1845 = vadd.xlane.f32.xlu0 %v1844_v55  ;;  %v1841_v56 = vsel %vm96_vm0, %v1839_v54, 0.0 }
 0xc3d   :  { %1842 = vadd.xlane.f32.xlu1 %v1841_v56  ;;  %4416 = vmatprep.subr.bf16.mxu0 %v4415_v2 }
 0xc3e   :  { %4418 = vmatpush3.bf16.msra.mxu0 %v4415_v2 }
 0xc3f   :  { %4420 = vmatprep.subr.bf16.mxu0 %v4419_v14 }
 0xc42   :  { %4422 = vmatpush3.bf16.msra.mxu0 %v4419_v14 }
 0xc43   :  { %4279 = vmatprep.subr.mxu0 %v4600_v8 }
 0xc45   :  { %4267 = vmatmul.mubr.msk.f32.vlgmr.msra.gmra.mrb[14].mxu0 %vm96_vm0, %v44_v23 }
 0xc46   :  { %4281 = vmatprep.mubr.msk.f32.mxu0 %vm4601_vm1, %v4600_v8 }
 0xcc9   :  { %v1846_v57 = vpop.xlane.xlu0 %1845 }
 0xcca   :  { %v1849_v52 = vmul.f32 0.03125, %v1846_v57  ;;  %v1843_v58 = vpop.xlane.xlu1 %1842 }
 0xccb   :  { %v1848_v59 = vmul.f32 0.03125, %v1843_v58 }
 0xccc   :  { %v1851_v60 = vsub.f32 %v1840_v53, %v1849_v52  ;;  %v4950_v52 = vld [vmem:[%s5154_s3] sm:$0xff] }
 0xccd   :  { %v1850_v61 = vsub.f32 %v1839_v54, %v1848_v59  ;;  %vm51_vm6 = vcmp.eq.f32.partialorder %v4950_v52, 0.0 }
 0xcce   :  { %v1853_v62 = vmul.f32 %v1851_v60, %v1851_v60  ;;  %v1867_v32 = vmul.f32 %v1865_v30, %v1851_v60 }
 0xccf   :  { %v1852_v63 = vmul.f32 %v1850_v61, %v1850_v61  ;;  %v1866_v34 = vmul.f32 %v1865_v30, %v1850_v61 }
 0xcd0   :  { %v1857_v0 = vsel %vm96_vm0, %v1853_v62, 0.0 }
 0xcd1   :  { %1858 = vadd.xlane.f32.xlu1 %v1857_v0  ;;  %v1854_v7 = vsel %vm96_vm0, %v1852_v63, 0.0 }
 0xcd2   :  { %1855 = vadd.xlane.f32.xlu0 %v1854_v7 }
 0xd18   :  { %v4268_v41 = vpop.f32.mrb[14].mxu0 }
 0xd19   :  { %v4910_v42 = vadd.f32 %v4268_v41, %v1968_v40  ;;  %v2041_v43 = vpop.f32.mrb[15].mxu0 }
 0xd1a   :  { %v4912_v44 = vadd.f32 %v2041_v43, %v1968_v40 }
 0xd1b   :  { %2458 = vrot.lane.b32.xlu1 %v4910_v42, %s4604_s21 }
 0xd5e   :  { %v1859_v24 = vpop.xlane.xlu1 %1858 }
 0xd5f   :  { %v1861_v25 = vmul.f32 0.03125, %v1859_v24  ;;  %v1856_v26 = vpop.xlane.xlu0 %1855 }
 0xd60   :  { %v1860_v27 = vmul.f32 0.03125, %v1856_v26 }
 0xd61   :  { %v1869_v28 = vadd.f32 1e-12, %v1861_v25 }
 0xd62   :  { %v1868_v21 = vadd.f32 1e-12, %v1860_v27 }
 0xd63   :  { %4508 = vrsqrt.f32 %v1869_v28 }
 0xd64   :  { %4510 = vrsqrt.f32 %v1868_v21 }
 0xd6d   :  { %v4509_v33 = vpop.eup %4508 }
 0xd6e   :  { %v4511_v22 = vpop.eup %4510  ;;  %v1873_v36 = vmul.f32 %v4509_v33, %v1867_v32 }
 0xd6f   :  { %v1872_v37 = vmul.f32 %v4511_v22, %v1866_v34 }
 0xd70   :  { %v4900_v39 = vadd.f32 %v1877_v35, %v1873_v36 }
 0xd71   :  { %v4898_v38 = vadd.f32 %v1877_v35, %v1872_v37 }
 0xd73   :  { %4255 = vmatprep.mubr.msk.f32.mxu1 %vm96_vm0, %v4898_v38 }
 0xd74   :  { %4256 = vmatmul.mubr.msk.f32.vlgmr.msra.gmra.mrb[22].mxu1 %vm96_vm0, %v4900_v39 }
 0xd75   :  { %4271 = vmatprep.mubr.msk.f32.mxu1 %vm4601_vm1, %v4600_v8  ;;  %4270 = vmatpush3.xpose.msk.msra.mxu1 %vm181_vm2, %v4912_v44 }
 0xd76   :  { %4274 = vmatprep.subr.mxu1 %v4600_v8 }
 0xd8d   :  { %v2459_v9 = vpop.permute.xlu1 %2458 }
 0xe47   :  { %v4257_v47 = vpop.f32.mrb[22].mxu1 }
 0xe48   :  { %v1956_v48 = vpop.f32.mrb[23].mxu1  ;;  %v4929_v50 = vadd.f32 %v4257_v47, %v1883_v46 }
 0xe49   :  { %v4921_v49 = vadd.f32 %v1956_v48, %v1883_v46 }
 0xe4b   :  { %4272 = vmatmul.mubr.msk.f32.vlgmr.msra.gmra.mrb[24].mxu1 %vm181_vm2, %v4921_v49 }
 0xe4c   :  { %4275 = vmatpush3.xpose.msk.msra.mxu1 %vm181_vm2, %v4910_v42  ;;  %4276 = vmatprep.mubr.msk.f32.mxu1 %vm4601_vm1, %v4600_v8 }
 0xe4d   :  { %4284 = vmatprep.subr.mxu1 %v4600_v8 }
 0xe4f   :  { %4277 = vmatmul.mubr.msk.f32.vlgmr.msra.gmra.mrb[26].mxu1 %vm181_vm2, %v4929_v50 }
 0xe50   :  { %4286 = vmatprep.mubr.msk.f32.mxu1 %vm4601_vm1, %v4600_v8 }
 0xf1e   :  { %v2122_v51 = vpop.f32.mrb[24].mxu1 }
 0xf1f   :  { %v4273_v53 = vpop.f32.mrb[25].mxu1  ;;  %v2202_v58 = vsel %vm51_vm6, -10000.0, %v2122_v51 }
 0xf20   :  { %v2204_v59 = vsel %vm181_vm2, %v2202_v58, -inf }
 0xf22   :  { %v2198_v54 = vpop.f32.mrb[26].mxu1 }
 0xf23   :  { %v2203_v55 = vsel %vm52_vm5, -10000.0, %v2198_v54  ;;  %v4278_v56 = vpop.f32.mrb[27].mxu1 }
 0xf24   :  { %v2207_v57 = vsel %vm181_vm2, %v2203_v55, -inf }
 0xf25   :  { %2208 = vmax.xlane.f32.xlu0 %v2207_v57 }
 0xf3b   :  { %2302 = vrot.lane.b32.xlu0 %v4910_v42, %s4602_s19 }
 0xf5a   :  { %2205 = vmax.xlane.f32.xlu0 %v2204_v59 }
 0xf70   :  { %2226 = vrot.lane.b32.xlu0 %v4912_v44, %s4602_s19 }
 0xf74   :  { %2378 = vrot.lane.b32.xlu0 %v4921_v49, %s4604_s21 }
 0xfb2   :  { %v2209_v60 = vpop.xlane.xlu0 %2208 }
 0xfb3   :  { %v2211_v61 = vsub.f32 %v2203_v55, %v2209_v60 }
 0xfb5   :  { %v2214_v62 = vmul.f32 1.442695, %v2211_v61 }
 0xfb6   :  { %v2303_v63 = vpop.permute.xlu0 %2302 }
 0xfb7   :  { %4512 = vpow2.f32 %v2214_v62  ;;  %4285 = vmatpush3.msra.mxu1 %v2303_v63 }
 0xfb8   :  { %4294 = vmatprep.subr.mxu1 %v4600_v8 }
 0xfc1   :  { %v4513_v0 = vpop.eup %4512 }
 0xfc2   :  { %v2219_v7 = vsel %vm181_vm2, %v4513_v0, 0.0 }
 0xfc3   :  { %2220 = vadd.xlane.f32.xlu1 %v2219_v7 }
 0xfd4   :  { %2456 = vrot.lane.b32.xlu1 %v4929_v50, %s4604_s21 }
 0xfe7   :  { %v2206_v5 = vpop.xlane.xlu0 %2205 }
 0xfe8   :  { %v2210_v1 = vsub.f32 %v2202_v58, %v2206_v5 }
 0xfea   :  { %v2212_v2 = vmul.f32 1.442695, %v2210_v1 }
 0xfeb   :  { %v2227_v3 = vpop.permute.xlu0 %2226 }
 0xfec   :  { %4514 = vpow2.f32 %v2212_v2  ;;  %4280 = vmatpush3.msra.mxu0 %v2227_v3 }
 0xfed   :  { %4289 = vmatprep.subr.mxu0 %v4600_v8 }
 0xfef   :  { %v2379_v25 = vpop.permute.xlu0 %2378 }
 0xff6   :  { %v4515_v4 = vpop.eup %4514 }
 0xff7   :  { %v2216_v6 = vsel %vm181_vm2, %v4515_v4, 0.0 }
 0xff8   :  { %2217 = vadd.xlane.f32.xlu1 %v2216_v6 }
0x1009   :  { %2380 = vrot.lane.b32.xlu1 %v4912_v44, %s4604_s21 }
0x1050   :  { %v2221_v13 = vpop.xlane.xlu1 %2220 }
0x1051   :  { %4516 = vrcp.f32 %v2221_v13  ;;  %v74_v13 = vld [vmem:[#allocation2 + $0x88] sm:$0xff] }
0x1054   :  { %v2457_v18 = vpop.permute.xlu1 %2456 }
0x105b   :  { %v4517_v14 = vpop.eup %4516 }
0x105c   :  { %v2225_v15 = vmul.f32 %v4517_v14, %v4513_v0  ;;  %v73_v14 = vld [vmem:[#allocation2 + $0x80] sm:$0xff] }
0x105e   :  { %4287 = vmatmul.mubr.msk.f32.vlgmr.msra.gmra.mrb[28].mxu1 %vm181_vm2, %v2225_v15 }
0x105f   :  { %4295 = vmatpush3.xpose.msk.msra.mxu1 %vm181_vm2, %v2459_v9  ;;  %4296 = vmatprep.mubr.msk.f32.mxu1 %vm4601_vm1, %v4600_v8 }
0x1060   :  { %4304 = vmatprep.subr.mxu1 %v4600_v8 }
0x1062   :  { %4297 = vmatmul.mubr.msk.f32.vlgmr.msra.gmra.mrb[30].mxu1 %vm181_vm2, %v2457_v18 }
0x1063   :  { %4306 = vmatprep.mubr.msk.f32.mxu1 %vm4601_vm1, %v4600_v8 }
0x1085   :  { %v2218_v19 = vpop.xlane.xlu1 %2217 }
0x1086   :  { %4518 = vrcp.f32 %v2218_v19 }
0x1089   :  { %v2381_v24 = vpop.permute.xlu1 %2380 }
0x1090   :  { %v4519_v20 = vpop.eup %4518 }
0x1091   :  { %v2224_v23 = vmul.f32 %v4519_v20, %v4515_v4 }
0x1093   :  { %4282 = vmatmul.mubr.msk.f32.vlgmr.msra.gmra.mrb[16].mxu0 %vm181_vm2, %v2224_v23 }
0x1094   :  { %4290 = vmatpush3.xpose.msk.msra.mxu0 %vm181_vm2, %v2381_v24  ;;  %4291 = vmatprep.mubr.msk.f32.mxu0 %vm4601_vm1, %v4600_v8 }
0x1095   :  { %4299 = vmatprep.subr.mxu0 %v4600_v8 }
0x1097   :  { %4292 = vmatmul.mubr.msk.f32.vlgmr.msra.gmra.mrb[18].mxu0 %vm181_vm2, %v2379_v25 }
0x1098   :  { %4301 = vmatprep.mubr.msk.f32.mxu0 %vm4601_vm1, %v4600_v8 }
0x1131   :  { %v4984_v26 = vpop.f32.mrb[28].mxu1 }
0x1132   :  { %v4288_v27 = vpop.f32.mrb[29].mxu1 }
0x1135   :  { %v2530_v28 = vpop.f32.mrb[30].mxu1 }
0x1136   :  { %v2535_v21 = vsel %vm52_vm5, -10000.0, %v2530_v28  ;;  %v4298_v30 = vpop.f32.mrb[31].mxu1 }
0x1137   :  { %v2539_v31 = vsel %vm181_vm2, %v2535_v21, -inf }
0x1138   :  { %2540 = vmax.xlane.f32.xlu1 %v2539_v31 }
0x1149   :  { %2874 = vrot.lane.b32.xlu1 %v4912_v44, %s4608_s28 }
0x114d   :  { %2872 = vrot.lane.b32.xlu1 %v4921_v49, %s4608_s28 }
0x1151   :  { %2950 = vrot.lane.b32.xlu1 %v4929_v50, %s4608_s28 }
0x1166   :  { %v4995_v32 = vpop.f32.mrb[16].mxu0 }
0x1167   :  { %v4283_v33 = vpop.f32.mrb[17].mxu0 }
0x1168   :  { %v75_v33 = vld [vmem:[#allocation2 + $0x90] sm:$0xff] }
0x116a   :  { %v2452_v34 = vpop.f32.mrb[18].mxu0 }
0x116b   :  { %v4293_v35 = vpop.f32.mrb[19].mxu0  ;;  %v2534_v41 = vsel %vm51_vm6, -10000.0, %v2452_v34 }
0x116c   :  { %v2536_v43 = vsel %vm181_vm2, %v2534_v41, -inf }
0x11c5   :  { %v2541_v22 = vpop.xlane.xlu1 %2540 }
0x11c6   :  { %v2543_v36 = vsub.f32 %v2535_v21, %v2541_v22 }
0x11c8   :  { %v2546_v37 = vmul.f32 1.442695, %v2543_v36 }
0x11c9   :  { %v2875_v47 = vpop.permute.xlu1 %2874 }
0x11ca   :  { %4520 = vpow2.f32 %v2546_v37 }
0x11cd   :  { %v2873_v53 = vpop.permute.xlu1 %2872 }
0x11d4   :  { %v4521_v16 = vpop.eup %4520 }
0x11d5   :  { %v2551_v40 = vsel %vm181_vm2, %v4521_v16, 0.0 }
0x11d6   :  { %2552 = vadd.xlane.f32.xlu0 %v2551_v40 }
0x11ec   :  { %2634 = vrot.lane.b32.xlu0 %v4910_v42, %s4605_s2 }
0x11f0   :  { %2952 = vrot.lane.b32.xlu0 %v4910_v42, %s4608_s28 }
0x120f   :  { %2537 = vmax.xlane.f32.xlu0 %v2536_v43 }
0x1225   :  { %2558 = vrot.lane.b32.xlu0 %v4912_v44, %s4605_s2 }
0x1229   :  { %3052 = vrot.lane.b32.xlu0 %v4912_v44, %s4606_s26 }
0x122d   :  { %3289 = vrot.lane.b32.xlu0 %v4912_v44, %s4611_s8 }
0x1231   :  { %3367 = vrot.lane.b32.xlu0 %v4910_v42, %s4611_s8 }
0x1235   :  { %3287 = vrot.lane.b32.xlu0 %v4921_v49, %s4611_s8 }
0x1239   :  { %3365 = vrot.lane.b32.xlu0 %v4929_v50, %s4611_s8  ;;  %v2951_v50 = vpop.permute.xlu1 %2950 }
0x1263   :  { %v2553_v45 = vpop.xlane.xlu0 %2552 }
0x1264   :  { %4522 = vrcp.f32 %v2553_v45 }
0x1267   :  { %v2635_v46 = vpop.permute.xlu0 %2634 }
0x1268   :  { %4305 = vmatpush3.msra.mxu1 %v2635_v46 }
0x1269   :  { %4319 = vmatprep.subr.mxu1 %v4600_v8 }
0x126b   :  { %v2953_v49 = vpop.permute.xlu0 %2952 }
0x126e   :  { %v4523_v48 = vpop.eup %4522 }
0x126f   :  { %v2557_v51 = vmul.f32 %v4523_v48, %v4521_v16 }
0x1271   :  { %4307 = vmatmul.mubr.msk.f32.vlgmr.msra.gmra.mrb[32].mxu1 %vm181_vm2, %v2557_v51 }
0x1272   :  { %4320 = vmatpush3.xpose.msk.msra.mxu1 %vm181_vm2, %v2875_v47  ;;  %4321 = vmatprep.mubr.msk.f32.mxu1 %vm4601_vm1, %v4600_v8 }
0x1273   :  { %4324 = vmatprep.subr.mxu1 %v4600_v8 }
0x1275   :  { %4322 = vmatmul.mubr.msk.f32.vlgmr.msra.gmra.mrb[34].mxu1 %vm181_vm2, %v2873_v53 }
0x1276   :  { %4325 = vmatpush3.xpose.msk.msra.mxu1 %vm181_vm2, %v2953_v49  ;;  %4326 = vmatprep.mubr.msk.f32.mxu1 %vm4601_vm1, %v4600_v8 }
0x1277   :  { %4334 = vmatprep.subr.mxu1 %v4600_v8 }
0x1279   :  { %4327 = vmatmul.mubr.msk.f32.vlgmr.msra.gmra.mrb[36].mxu1 %vm181_vm2, %v2951_v50 }
0x127a   :  { %4336 = vmatprep.mubr.msk.f32.mxu1 %vm4601_vm1, %v4600_v8 }
0x129c   :  { %v2538_v54 = vpop.xlane.xlu0 %2537 }
0x129d   :  { %v2542_v55 = vsub.f32 %v2534_v41, %v2538_v54 }
0x129f   :  { %v2544_v56 = vmul.f32 1.442695, %v2542_v55 }
0x12a0   :  { %v2559_v57 = vpop.permute.xlu0 %2558 }
0x12a1   :  { %4524 = vpow2.f32 %v2544_v56  ;;  %4300 = vmatpush3.msra.mxu0 %v2559_v57 }
0x12a2   :  { %4309 = vmatprep.subr.mxu0 %v74_v13 }
0x12a4   :  { %v3053_v34 = vpop.permute.xlu0 %3052 }
0x12a8   :  { %v3290_v37 = vpop.permute.xlu0 %3289 }
0x12ab   :  { %v4525_v58 = vpop.eup %4524 }
0x12ac   :  { %v2548_v59 = vsel %vm181_vm2, %v4525_v58, 0.0 }
0x12ad   :  { %2549 = vadd.xlane.f32.xlu1 %v2548_v59 }
0x133a   :  { %v2550_v60 = vpop.xlane.xlu1 %2549 }
0x133b   :  { %4526 = vrcp.f32 %v2550_v60 }
0x1344   :  { %v2706_v61 = vpop.f32.mrb[32].mxu1 }
0x1345   :  { %v4527_v62 = vpop.eup %4526  ;;  %v4308_v63 = vpop.f32.mrb[33].mxu1 }
0x1346   :  { %v2556_v0 = vmul.f32 %v4527_v62, %v4525_v58 }
0x1348   :  { %4302 = vmatmul.mubr.msk.f32.vlgmr.msra.gmra.mrb[20].mxu0 %vm181_vm2, %v2556_v0  ;;  %v2946_v7 = vpop.f32.mrb[34].mxu1 }
0x1349   :  { %v3028_v5 = vsel %vm51_vm6, -10000.0, %v2946_v7  ;;  %v4323_v1 = vpop.f32.mrb[35].mxu1  ;;  %4310 = vmatpush3.msra.mxu0 %v74_v13 }
0x134a   :  { %v3030_v2 = vsel %vm181_vm2, %v3028_v5, -inf  ;;  %4314 = vmatprep.subr.mxu0 %v73_v14 }
0x134b   :  { %3031 = vmax.xlane.f32.xlu1 %v3030_v2 }
0x134c   :  { %v3024_v3 = vpop.f32.mrb[36].mxu1 }
0x134d   :  { %v3029_v4 = vsel %vm52_vm5, -10000.0, %v3024_v3  ;;  %v4328_v6 = vpop.f32.mrb[37].mxu1 }
0x134e   :  { %v3033_v9 = vsel %vm181_vm2, %v3029_v4, -inf }
0x134f   :  { %3034 = vmax.xlane.f32.xlu1 %v3033_v9 }
0x13d8   :  { %v3032_v15 = vpop.xlane.xlu1 %3031 }
0x13d9   :  { %v3036_v18 = vsub.f32 %v3028_v5, %v3032_v15 }
0x13db   :  { %v3038_v19 = vmul.f32 1.442695, %v3036_v18 }
0x13dc   :  { %v3035_v20 = vpop.xlane.xlu1 %3034 }
0x13dd   :  { %4528 = vpow2.f32 %v3038_v19  ;;  %v3037_v23 = vsub.f32 %v3029_v4, %v3035_v20  ;;  %v76_v4 = vld [vmem:[#allocation2 + $0x98] sm:$0xff]  ;;  %v4548_v20 = vld [vmem:[%s5157_s6] sm:$0xff] }
0x13df   :  { %v3040_v24 = vmul.f32 1.442695, %v3037_v23 }
0x13e1   :  { %4530 = vpow2.f32 %v3040_v24 }
0x13e7   :  { %v4529_v25 = vpop.eup %4528 }
0x13e8   :  { %v3042_v27 = vsel %vm181_vm2, %v4529_v25, 0.0 }
0x13e9   :  { %3043 = vadd.xlane.f32.xlu1 %v3042_v27 }
0x13eb   :  { %v4531_v28 = vpop.eup %4530 }
0x13ec   :  { %v3045_v21 = vsel %vm181_vm2, %v4531_v28, 0.0 }
0x13ed   :  { %3046 = vadd.xlane.f32.xlu1 %v3045_v21 }
0x13fe   :  { %3128 = vrot.lane.b32.xlu1 %v4910_v42, %s4606_s26 }
0x141b   :  { %v2630_v30 = vpop.f32.mrb[20].mxu0 }
0x141c   :  { %v4303_v31 = vpop.f32.mrb[21].mxu0  ;;  %4311 = vmatprep.mubr.msk.f32.mxu0 %vm181_vm2, %v2630_v30 }
0x141d   :  { %4312 = vmatmul.mubr.msk.f32.vlgmr.msra.gmra.mrb[22].mxu0 %vm181_vm2, %v2706_v61 }
0x141e   :  { %4316 = vmatprep.mubr.msk.f32.mxu0 %vm181_vm2, %v4995_v32  ;;  %4315 = vmatpush3.msra.mxu0 %v73_v14 }
0x141f   :  { %4329 = vmatprep.subr.mxu0 %v4600_v8 }
0x1425   :  { %4317 = vmatmul.mubr.msk.f32.vlgmr.msra.gmra.mrb[22].mxu0 %vm181_vm2, %v4984_v26  ;;  %v3368_v26 = vpop.permute.xlu0 %3367 }
0x1426   :  { %4330 = vmatpush3.msra.mxu0 %v3053_v34  ;;  %4331 = vmatprep.mubr.msk.f32.mxu0 %vm4601_vm1, %v4600_v8 }
0x1427   :  { %4339 = vmatprep.subr.mxu0 %v75_v33 }
0x1429   :  { %v3288_v43 = vpop.permute.xlu0 %3287 }
0x142d   :  { %v3366_v51 = vpop.permute.xlu0 %3365 }
0x1476   :  { %v3044_v35 = vpop.xlane.xlu1 %3043 }
0x1477   :  { %4532 = vrcp.f32 %v3044_v35 }
0x147a   :  { %v3047_v22 = vpop.xlane.xlu1 %3046 }
0x147b   :  { %4534 = vrcp.f32 %v3047_v22 }
0x147e   :  { %v3129_v36 = vpop.permute.xlu1 %3128 }
0x147f   :  { %4335 = vmatpush3.msra.mxu1 %v3129_v36 }
0x1480   :  { %4344 = vmatprep.subr.mxu1 %v4600_v8 }
0x1481   :  { %v4533_v32 = vpop.eup %4532 }
0x1482   :  { %v3050_v16 = vmul.f32 %v4533_v32, %v4529_v25 }
0x1484   :  { %4332 = vmatmul.mubr.msk.f32.vlgmr.msra.gmra.mrb[24].mxu0 %vm181_vm2, %v3050_v16 }
0x1485   :  { %v4535_v40 = vpop.eup %4534  ;;  %4340 = vmatpush3.msra.mxu0 %v75_v33 }
0x1486   :  { %v3051_v41 = vmul.f32 %v4535_v40, %v4531_v28  ;;  %4349 = vmatprep.subr.mxu0 %v4600_v8 }
0x1488   :  { %4337 = vmatmul.mubr.msk.f32.vlgmr.msra.gmra.mrb[38].mxu1 %vm181_vm2, %v3051_v41  ;;  %v79_v41 = vld [vmem:[#allocation2 + $0xa8] sm:$0xff] }
0x1489   :  { %4345 = vmatpush3.xpose.msk.msra.mxu1 %vm181_vm2, %v3290_v37  ;;  %4346 = vmatprep.mubr.msk.f32.mxu1 %vm4601_vm1, %v4600_v8 }
0x148a   :  { %4354 = vmatprep.subr.mxu1 %v4600_v8 }
0x148c   :  { %4347 = vmatmul.mubr.msk.f32.vlgmr.msra.gmra.mrb[40].mxu1 %vm181_vm2, %v3288_v43 }
0x148d   :  { %4356 = vmatprep.mubr.msk.f32.mxu1 %vm4601_vm1, %v4600_v8 }
0x1557   :  { %v3124_v45 = vpop.f32.mrb[24].mxu0 }
0x1558   :  { %v4333_v46 = vpop.f32.mrb[25].mxu0  ;;  %4341 = vmatprep.mubr.msk.f32.mxu0 %vm181_vm2, %v3124_v45  ;;  %v80_v45 = vld [vmem:[#allocation2 + $0xb0] sm:$0xff] }
0x1559   :  { %v81_v46 = vld [vmem:[#allocation2 + $0xb8] sm:$0xff] }
0x155b   :  { %v3200_v47 = vpop.f32.mrb[38].mxu1 }
0x155c   :  { %v4338_v48 = vpop.f32.mrb[39].mxu1  ;;  %4342 = vmatmul.mubr.msk.f32.vlgmr.msra.gmra.mrb[22].mxu0 %vm181_vm2, %v3200_v47  ;;  %v4427_v47 = vpack.c.bf16 %v81_v46, %v80_v45 }
0x155d   :  { %4350 = vmatpush3.xpose.msk.msra.mxu0 %vm181_vm2, %v3368_v26  ;;  %4351 = vmatprep.mubr.msk.f32.mxu0 %vm4601_vm1, %v4600_v8  ;;  %v82_v48 = vld [vmem:[%s5156_s5] sm:$0xff] }
0x155e   :  { %4359 = vmatprep.subr.mxu0 %v4600_v8 }
0x155f   :  { %v3361_v53 = vpop.f32.mrb[40].mxu1 }
0x1560   :  { %v3443_v49 = vsel %vm51_vm6, -10000.0, %v3361_v53  ;;  %v4348_v50 = vpop.f32.mrb[41].mxu1  ;;  %4352 = vmatmul.mubr.msk.f32.vlgmr.msra.gmra.mrb[26].mxu0 %vm181_vm2, %v3366_v51  ;;  %v83_v51 = vld [vmem:[%s5156_s5 + $0x8] sm:$0xff]  ;;  %v84_v53 = vld [vmem:[%s5156_s5 + $0x10] sm:$0xff] }
0x1561   :  { %v3445_v54 = vsel %vm181_vm2, %v3443_v49, -inf  ;;  %4361 = vmatprep.mubr.msk.f32.mxu0 %vm4601_vm1, %v4600_v8  ;;  %v85_v50 = vld [vmem:[%s5156_s5 + $0x18] sm:$0xff] }
0x1562   :  { %3446 = vmax.xlane.f32.xlu1 %v3445_v54  ;;  %v4435_v54 = vpack.c.bf16 %v85_v50, %v84_v53 }
0x15ef   :  { %v3447_v55 = vpop.xlane.xlu1 %3446 }
0x15f0   :  { %v3451_v56 = vsub.f32 %v3443_v49, %v3447_v55  ;;  %v4431_v49 = vpack.c.bf16 %v83_v51, %v82_v48  ;;  %v86_v55 = vld [vmem:[%s5156_s5 + $0x20] sm:$0xff] }
0x15f2   :  { %v3453_v57 = vmul.f32 1.442695, %v3451_v56  ;;  %v87_v56 = vld [vmem:[%s5156_s5 + $0x28] sm:$0xff] }
0x15f4   :  { %4536 = vpow2.f32 %v3453_v57  ;;  %v4439_v57 = vpack.c.bf16 %v87_v56, %v86_v55 }
0x15fe   :  { %v4537_v61 = vpop.eup %4536 }
0x15ff   :  { %v3457_v62 = vsel %vm181_vm2, %v4537_v61, 0.0 }
0x1633   :  { %v3439_v58 = vpop.f32.mrb[26].mxu0 }
0x1634   :  { %v3444_v59 = vsel %vm52_vm5, -10000.0, %v3439_v58  ;;  %v4353_v60 = vpop.f32.mrb[27].mxu0 }
0x1635   :  { %v3448_v52 = vsel %vm181_vm2, %v3444_v59, -inf }
0x1636   :  { %3449 = vmax.xlane.f32.xlu0 %v3448_v52 }
0x163a   :  { %3458 = vadd.xlane.f32.xlu0 %v3457_v62 }
0x1650   :  { %3467 = vrot.lane.b32.xlu0 %v4912_v44, %s4610_s30 }
0x16c3   :  { %v3450_v8 = vpop.xlane.xlu0 %3449 }
0x16c4   :  { %v3452_v63 = vsub.f32 %v3444_v59, %v3450_v8  ;;  %v3732_v8 = vsub.s32 7, %v4685_v10 }
0x16c6   :  { %v3455_v0 = vmul.f32 1.442695, %v3452_v63  ;;  %v3733_v63 = vrot.slane %v4548_v20, %v3732_v8 }
0x16c7   :  { %v3459_v7 = vpop.xlane.xlu0 %3458 }
0x16c8   :  { %4538 = vpow2.f32 %v3455_v0  ;;  %v91_v0 = vld [vmem:[%s5157_s6 + $0x8] sm:$0xff] }
0x16c9   :  { %4540 = vrcp.f32 %v3459_v7 }
0x16cb   :  { %v3468_v5 = vpop.permute.xlu0 %3467 }
0x16cc   :  { %4355 = vmatpush3.msra.mxu1 %v3468_v5 }
0x16d2   :  { %v4539_v12 = vpop.eup %4538 }
0x16d3   :  { %v4541_v1 = vpop.eup %4540  ;;  %v3460_v2 = vsel %vm181_vm2, %v4539_v12, 0.0 }
0x16d4   :  { %v3465_v3 = vmul.f32 %v4541_v1, %v4537_v61  ;;  %3461 = vadd.xlane.f32.xlu1 %v3460_v2 }
0x16d6   :  { %4357 = vmatmul.mubr.msk.f32.vlgmr.msra.gmra.mrb[42].mxu1 %vm181_vm2, %v3465_v3 }
0x16e5   :  { %3543 = vrot.lane.b32.xlu1 %v4910_v42, %s4610_s30  ;;  %v3704_v42 = vsub.s32 6, %v4685_v10 }
0x16e7   :  { %v3705_v23 = vrot.slane %v4548_v20, %v3704_v42 }
0x1761   :  { %v3462_v44 = vpop.xlane.xlu1 %3461 }
0x1762   :  { %4542 = vrcp.f32 %v3462_v44 }
0x1765   :  { %v3544_v6 = vpop.permute.xlu1 %3543 }
0x1766   :  { %4360 = vmatpush3.msra.mxu0 %v3544_v6 }
0x1767   :  { %4364 = vmatprep.subr.mxu0 %v76_v4 }
0x176c   :  { %v4543_v9 = vpop.eup %4542 }
0x176d   :  { %v3466_v13 = vmul.f32 %v4543_v9, %v4539_v12  ;;  %v3745_v12 = vrot.slane %v91_v0, %v94_v11  ;;  %v88_v9 = vld [vmem:[%s5156_s5 + $0x30] sm:$0xff]  ;;  %v3751_v11 = vrot.slane %v91_v0, %v1835_v17 }
0x176f   :  { %4362 = vmatmul.mubr.msk.f32.vlgmr.msra.gmra.mrb[28].mxu0 %vm181_vm2, %v3466_v13  ;;  %v89_v13 = vld [vmem:[%s5156_s5 + $0x38] sm:$0xff]  ;;  %s3928_s5 = sshll.u32 %s4613_s13, 4  ;;  %s3929_s5 = int_to_ptr.vmem [resolvable:$true] %s3928_s5 }
0x1770   :  { %4365 = vmatpush3.msra.mxu0 %v76_v4  ;;  %s4571_s14 = scalar_lea.vmem %s3929_s5, 256  ;;  %p4576_p9 = scmp.lt.s32.totalorder %s3929_s5, %s3929_s5 }
0x1771   :  { %4432 = vmatprep.subr.bf16.mxu0 %v4431_v49  ;;  %p4572_p8 = scmp.ne.s32.totalorder %s3929_s5, %s4571_s14  ;;  %p4577_p10 = scmp.lt.s32.totalorder %s4571_s14, %s4571_s14 }
0x1773   :  { %p4578_p11 = por %p4577_p10, %p4576_p9 }
0x1775   :  { %p4579_p12 = pnand %p4578_p11, %p4572_p8 }
0x17a9   :  { %v3539_v14 = vpop.f32.mrb[42].mxu1 }
0x17aa   :  { %v4358_v15 = vpop.f32.mrb[43].mxu1  ;;  %4366 = vmatprep.mubr.msk.f32.mxu0 %vm181_vm2, %v3539_v14  ;;  %v4443_v14 = vpack.c.bf16 %v89_v13, %v88_v9 }
0x1842   :  { %v3615_v18 = vpop.f32.mrb[28].mxu0 }
0x1843   :  { %v4363_v19 = vpop.f32.mrb[29].mxu0  ;;  %4367 = vmatmul.mubr.msk.f32.vlgmr.msra.gmra.mrb[22].mxu0 %vm181_vm2, %v3615_v18 }
0x1844   :  { %4434 = vmatpush3.bf16.msra.mxu0 %v4431_v49 }
0x1845   :  { %4436 = vmatprep.subr.bf16.mxu0 %v4435_v54 }
0x1848   :  { %4438 = vmatpush3.bf16.msra.mxu0 %v4435_v54 }
0x1849   :  { %4440 = vmatprep.subr.bf16.mxu0 %v4439_v57 }
0x184c   :  { %4442 = vmatpush3.bf16.msra.mxu0 %v4439_v57 }
0x184d   :  { %4444 = vmatprep.subr.bf16.mxu0 %v4443_v14 }
0x1850   :  { %4446 = vmatpush3.bf16.msra.mxu0 %v4443_v14 }
0x1916   :  { %v4368_v24 = vpop.f32.mrb[22].mxu0 }
0x1917   :  { %v3707_v25 = vadd.f32 %v4368_v24, %v3705_v23  ;;  %v3691_v27 = vpop.f32.mrb[23].mxu0  ;;  %v3838_v24 = vrot.slane %v91_v0, %v1864_v29 }
0x1918   :  { %v3706_v28 = vadd.f32 %v3705_v23, %v3691_v27 }
0x1919   :  { %v3709_v21 = vadd.f32 %v3707_v25, %v4900_v39 }
0x191a   :  { %v3708_v30 = vadd.f32 %v3706_v28, %v4898_v38  ;;  %v78_v38 = vld [vmem:[#allocation2 + $0xa0] sm:$0xff] }
0x191b   :  { %v3713_v31 = vsel %vm96_vm0, %v3709_v21, 0.0  ;;  %v4423_v43 = vpack.c.bf16 %v79_v41, %v78_v38 }
0x191c   :  { %3714 = vadd.xlane.f32.xlu0 %v3713_v31  ;;  %v3710_v33 = vsel %vm96_vm0, %v3708_v30, 0.0 }
0x191d   :  { %3711 = vadd.xlane.f32.xlu1 %v3710_v33  ;;  %4424 = vmatprep.subr.bf16.mxu1 %v4423_v43 }
0x191e   :  { %4426 = vmatpush3.bf16.msra.mxu1 %v4423_v43 }
0x191f   :  { %4428 = vmatprep.subr.bf16.mxu1 %v4427_v47 }
0x1922   :  { %4430 = vmatpush3.bf16.msra.mxu1 %v4427_v47 }
0x19a9   :  { %v3715_v34 = vpop.xlane.xlu0 %3714 }
0x19aa   :  { %v3717_v35 = vmul.f32 0.03125, %v3715_v34  ;;  %v3712_v22 = vpop.xlane.xlu1 %3711 }
0x19ab   :  { %v3716_v36 = vmul.f32 0.03125, %v3712_v22 }
0x19ac   :  { %v3719_v37 = vsub.f32 %v3709_v21, %v3717_v35 }
0x19ad   :  { %v3718_v32 = vsub.f32 %v3708_v30, %v3716_v36 }
0x19ae   :  { %v3721_v16 = vmul.f32 %v3719_v37, %v3719_v37  ;;  %v3735_v7 = vmul.f32 %v3733_v63, %v3719_v37 }
0x19af   :  { %v3720_v40 = vmul.f32 %v3718_v32, %v3718_v32  ;;  %v3734_v1 = vmul.f32 %v3733_v63, %v3718_v32 }
0x19b0   :  { %v3725_v26 = vsel %vm96_vm0, %v3721_v16, 0.0 }
0x19b1   :  { %3726 = vadd.xlane.f32.xlu1 %v3725_v26  ;;  %v3722_v39 = vsel %vm96_vm0, %v3720_v40, 0.0 }
0x19b2   :  { %3723 = vadd.xlane.f32.xlu0 %v3722_v39 }
0x1a3e   :  { %v3727_v58 = vpop.xlane.xlu1 %3726 }
0x1a3f   :  { %v3729_v59 = vmul.f32 0.03125, %v3727_v58  ;;  %v3724_v60 = vpop.xlane.xlu0 %3723 }
0x1a40   :  { %v3728_v52 = vmul.f32 0.03125, %v3724_v60 }
0x1a41   :  { %v3737_v61 = vadd.f32 1e-12, %v3729_v59 }
0x1a42   :  { %v3736_v62 = vadd.f32 1e-12, %v3728_v52 }
0x1a43   :  { %4544 = vrsqrt.f32 %v3737_v61 }
0x1a44   :  { %4546 = vrsqrt.f32 %v3736_v62 }
0x1a4d   :  { %v4545_v5 = vpop.eup %4544 }
0x1a4e   :  { %v4547_v2 = vpop.eup %4546  ;;  %v3741_v3 = vmul.f32 %v4545_v5, %v3735_v7 }
0x1a4f   :  { %v3740_v44 = vmul.f32 %v4547_v2, %v3734_v1 }
0x1a50   :  { %v3747_v6 = vadd.f32 %v3745_v12, %v3741_v3 }
0x1a51   :  { %v3746_v4 = vadd.f32 %v3745_v12, %v3740_v44 }
0x1a53   :  { %4377 = vmatprep.mubr.msk.f32.mxu1 %vm96_vm0, %v3746_v4 }
0x1a54   :  { %4378 = vmatmul.mubr.msk.f32.vlgmr.msra.gmra.mrb[44].mxu1 %vm96_vm0, %v3747_v6 }
0x1b27   :  { %v4379_v15 = vpop.f32.mrb[44].mxu1 }
0x1b28   :  { %v3830_v18 = vadd.f32 %v4379_v15, %v3751_v11  ;;  %v3824_v19 = vpop.f32.mrb[45].mxu1 }
0x1b29   :  { %v3825_v42 = vadd.f32 %v3824_v19, %v3751_v11 }
0x1b2a   :  { %v3834_v23 = vmax.f32 %v3830_v18, 0.0 }
0x1b2b   :  { %v3833_v20 = vmax.f32 %v3825_v42, 0.0 }
0x1b2d   :  { %4396 = vmatprep.mubr.msk.f32.mxu0 %vm3839_vm7, %v3833_v20 }
0x1b2e   :  { %4397 = vmatmul.mubr.msk.f32.vlgmr.msra.gmra.mrb[30].mxu0 %vm3839_vm7, %v3834_v23 }
0x1c01   :  { %v4398_v25 = vpop.f32.mrb[30].mxu0 }
0x1c02   :  { %v3918_v27 = vadd.f32 %v4398_v25, %v3838_v24  ;;  %v3912_v28 = vpop.f32.mrb[31].mxu0 }
0x1c03   :  { %v3913_v21 = vadd.f32 %v3912_v28, %v3838_v24 }
0x1c04   :  { %3922 = vst.msk [vmem:[#allocation5 + $0x8] sm:$0xff] %vm96_vm0, %v3918_v27 }
0x1c05   :  { %3921 = vst.msk [vmem:[#allocation5] sm:$0xff] %vm96_vm0, %v3913_v21 }
0x1c06   :  { %4582 = shalt.err (!%p4579_p12)
}
0x1c07   :  { %s4583_s16 = scalar_lea.hbm %s5158_s7, 256 }
0x1c08   :  { %p4584_p13 = scmp.ne.s32.totalorder %s5158_s7, %s4583_s16  ;;  %p4587_p0 = scmp.lt.u32.totalorder %s4583_s16, %s5158_s7 }
0x1c0a   :  { %p4589_p1 = pnand %p4587_p0, %p4584_p13 }
0x1c0c   :  { %4592 = shalt.err (!%p4589_p1)
}
0x1c0d   :  { %3934 = dma.vmem_to_hbm [thread:$0]  %s3929_s5, 256, %s5158_s7, [#allocation4], %s4598_s11, %s4598_s11, %s4599_s12  }
0x1c0e   :  { %4595 = dma.done.wait [#allocation4], 256  }
0x1c0f   :  { %4596 = vsyncadd [#allocation4], 4294967040 }
0x1c10   :  { %3938 = vsyncpa [#allocation3], 1 }
0x1c11   :  { %3939 = vsyncpa [#allocation4], 1 }

</bundles_post_ra>
